<compile_context>
chip_gen: v5e
topology: v5e:2x2
jax: 0.10.0
libtpu: 0.0.40
codegen_flags: <defaults>
</compile_context>

<pallas_src>
import jax
import jax.numpy as jnp
from jax.experimental import pallas as pl
from jax.experimental.pallas import tpu as pltpu


def _round_up(x, m):
    return (x + m - 1) // m * m


def _make_aspp_kernel(H, W, Cin, Cout, Wp, P, L, K, K_pad, pmax, tap_starts):
    """Per-image ASPP kernel.

    x_ref     : (1, H, Cin, W)  bf16  image rows, channels on sublanes
    wt_ref    : (Cout, K_pad)   bf16  folded + packed tap weights (transposed)
    b_ref     : (Cout, 1)       f32   fused bias
    o_ref     : (1, Cout, P)    f32   P = H*Wp (wrapper strips junk columns)
    xflat_ref : (Cin, L)        bf16  zero-padded image, flattened spatial
    col_ref   : (K_pad, P)      bf16  im2col matrix
    """

    def kernel(x_ref, wt_ref, b_ref, o_ref, xflat_ref, col_ref):
        # ---- zero the flat padded-image scratch -----------------------------
        # Cin on sublanes + flat spatial on lanes => only ceil(L/128) vector
        # stores; halo-only zeroing would need more (shorter, masked) stores.
        xflat_ref[...] = jnp.zeros((Cin, L), jnp.bfloat16)

        # ---- copy image rows into the interior of the padded flat layout ----
        for h in range(H):                                    # static unroll
            base = (pmax + h) * Wp + pmax
            xflat_ref[:, pl.ds(base, W)] = x_ref[0, h]        # (Cin, W)

        # ---- build the im2col matrix: one contiguous lane slice per tap -----
        # col[t*Cin:(t+1)*Cin, u] = xflat[:, tap_start[t] + u]; for output
        # pixel (h, w), u = h*Wp + w, so a single (Cout,K)x(K,P) matmul covers
        # every branch / tap / channel at once.
        for t, s in enumerate(tap_starts):                    # static unroll
            col_ref[pl.ds(t * Cin, Cin), :] = xflat_ref[:, pl.ds(s, P)]

        # K padding rows: their weights are zero, but 0 * (uninitialised VMEM
        # NaN) would still poison the result, so zero them explicitly.
        if K_pad > K:
            col_ref[pl.ds(K, K_pad - K), :] = jnp.zeros(
                (K_pad - K, P), jnp.bfloat16)

        # ---- single MXU matmul; result is already (Cout, spatial) -----------
        acc = jnp.dot(wt_ref[...], col_ref[...],
                      preferred_element_type=jnp.float32)     # (Cout, P) f32
        o_ref[0] = acc + b_ref[...]                           # fused bias

    return kernel


def aspp_forward(x_nchw, w3, b3, w1a, b1a, w1b, b1b, pyramids):
    """ASPP forward. x_nchw: (N, Cin, H, W) f32 -> (N, Cout, H, W) f32.

    w3 : (nb, 3, 3, Cin, Cin)  HWIO 3x3 dilated conv, bias b3 (nb, Cin)
    w1a: (nb, Cin, Cin)        1x1 conv (in, out),   bias b1a (nb, Cin)
    w1b: (nb, Cin, Cout)       1x1 conv (in, out),   bias b1b (nb, Cout)
    """
    N, Cin, H, W = x_nchw.shape
    Cout = w1b.shape[-1]
    pmax = max(pyramids)
    Wp = W + 2 * pmax

    # ---- fold every branch's three convs into per-tap (Cin, Cout) matrices --
    #   y_b = ((x (*) w3_b + b3_b) @ w1a_b + b1a_b) @ w1b_b + b1b_b
    #       =  x (*) (w3_b @ w1a_b @ w1b_b) + fused_bias_b
    # Taps from different branches at the same spatial offset are summed and
    # all biases collapse into one (Cout,) vector.
    off_to_w = {}
    bias = jnp.zeros((Cout,), jnp.float32)
    for bi, d in enumerate(pyramids):
        w12 = jnp.dot(w1a[bi], w1b[bi])                            # (Cin, Cout)
        bias = bias + jnp.dot(jnp.dot(b3[bi], w1a[bi]) + b1a[bi], w1b[bi]) + b1b[bi]
        for ky in range(3):
            for kx in range(3):
                h0 = pmax + (ky - 1) * d
                w0 = pmax + (kx - 1) * d
                wf = jnp.dot(w3[bi, ky, kx], w12)                  # (Cin, Cout)
                if (h0, w0) in off_to_w:
                    off_to_w[(h0, w0)] = off_to_w[(h0, w0)] + wf
                else:
                    off_to_w[(h0, w0)] = wf
    offsets = tuple(sorted(off_to_w.keys()))                       # static
    tap_starts = tuple(h0 * Wp + w0 for (h0, w0) in offsets)       # flat offsets

    K = len(offsets) * Cin
    K_pad = _round_up(K, 128)          # full systolic fill on v5e's 128x128 MXU
    w_k = jnp.concatenate([off_to_w[o] for o in offsets], axis=0)  # (K, Cout)
    wt = jnp.zeros((Cout, K_pad), jnp.float32).at[:, :K].set(w_k.T)
    wt = wt.astype(jnp.bfloat16)                                   # MXU operand
    bias = bias.reshape(Cout, 1)                                   # f32

    # Matmul spatial extent: P = H*Wp columns (covers the last interior flat
    # index); L covers the largest tap offset plus P, rounded to 128 lanes.
    P = H * Wp
    L = _round_up(2 * (pmax * Wp + pmax) + P, 128)

    # (N, Cin, H, W) -> (N, H, Cin, W): each image row becomes a natural
    # (Cin, W) tile load in the kernel; cast once to bf16 for the MXU.
    x_rows = jnp.transpose(x_nchw, (0, 2, 1, 3)).astype(jnp.bfloat16)

    kernel = _make_aspp_kernel(H, W, Cin, Cout, Wp, P, L, K, K_pad, pmax,
                               tap_starts)

    out = pl.pallas_call(
        kernel,
        out_shape=jax.ShapeDtypeStruct((N, Cout, P), jnp.float32),
        grid=(N,),
        in_specs=[
            pl.BlockSpec((1, H, Cin, W), lambda n: (n, 0, 0, 0)),  # image rows
            pl.BlockSpec((Cout, K_pad), lambda n: (0, 0)),         # packed weights
            pl.BlockSpec((Cout, 1), lambda n: (0, 0)),             # fused bias
        ],
        out_specs=pl.BlockSpec((1, Cout, P), lambda n: (n, 0, 0)),
        scratch_shapes=[
            pltpu.VMEM((Cin, L), jnp.bfloat16),     # flat zero-padded image
            pltpu.VMEM((K_pad, P), jnp.bfloat16),   # im2col matrix
        ],
        compiler_params=pltpu.CompilerParams(
            dimension_semantics=("parallel",),
            vmem_limit_bytes=32 * 1024 * 1024),
    )(x_rows, wt, bias)

    # (N, Cout, H*Wp): reshape is free; the [:W] slice strips the junk columns.
    return out.reshape(N, Cout, H, Wp)[:, :, :, :W]


def _reference_forward(x_nchw, w3, b3, w1a, b1a, w1b, b1b, pyramids):
    """Plain-JAX f32 reference (mirrors the PyTorch module) for verification."""
    x = jnp.transpose(x_nchw, (0, 2, 3, 1)).astype(jnp.float32)  # NHWC
    res = 0.0
    for bi, d in enumerate(pyramids):
        y = jax.lax.conv_general_dilated(
            x, w3[bi], window_strides=(1, 1),
            padding=[(d, d), (d, d)], rhs_dilation=(d, d),
            dimension_numbers=("NHWC", "HWIO", "NHWC")) + b3[bi]
        y = jnp.einsum("nhwc,cd->nhwd", y, w1a[bi]) + b1a[bi]
        y = jnp.einsum("nhwc,cd->nhwd", y, w1b[bi]) + b1b[bi]
        res = res + y
    return jnp.transpose(res, (0, 3, 1, 2))


if __name__ == "__main__":
    # Module config (small, consistent with the PyTorch __init__):
    inplanes, outplanes = 4, 8
    pyramids = [1, 2, 4]          # (dilation, padding) pairs, padding == dilation
    nb = len(pyramids)

    N, H, W = 2, 16, 16
    key = jax.random.PRNGKey(0)
    k_x, k_w3, k_w1a, k_w1b, k_b3, k_b1a, k_b1b = jax.random.split(key, 7)

    x = jax.random.normal(k_x, (N, inplanes, H, W), dtype=jnp.float32)
    # Weights as in nn.init.normal(std=0.01).
    w3 = 0.01 * jax.random.normal(k_w3, (nb, 3, 3, inplanes, inplanes), jnp.float32)
    w1a = 0.01 * jax.random.normal(k_w1a, (nb, inplanes, inplanes), jnp.float32)
    w1b = 0.01 * jax.random.normal(k_w1b, (nb, inplanes, outplanes), jnp.float32)
    # The module inits biases to 0; use small non-zero biases here (scaled so
    # each folded term contributes at a comparable magnitude) so the
    # bias-folding arithmetic is genuinely exercised by the check.
    b3 = 2e-2 * jax.random.normal(k_b3, (nb, inplanes), jnp.float32)
    b1a = 1e-3 * jax.random.normal(k_b1a, (nb, inplanes), jnp.float32)
    b1b = 1e-5 * jax.random.normal(k_b1b, (nb, outplanes), jnp.float32)

    out = aspp_forward(x, w3, b3, w1a, b1a, w1b, b1b, pyramids)
    out = jax.block_until_ready(out)

    ref = _reference_forward(x, w3, b3, w1a, b1a, w1b, b1b, pyramids)
    assert out.shape == (N, outplanes, H, W), out.shape
    max_err = float(jnp.max(jnp.abs(out - ref)))
    # bf16 MXU operands + f32 accumulate: tolerance sized well above bf16
    # rounding noise but well below any single wrong-tap / wrong-fold error.
    assert jnp.allclose(out, ref, atol=5e-6, rtol=2e-2), max_err

    print("KERNEL_OK")
</pallas_src>

<mosaic_0001>
module attributes {stable_mosaic.version = 11 : i64} {
  func.func @kernel(%arg0: i32, %arg1: memref<1x16x4x16xbf16, #tpu.memory_space<vmem>>, %arg2: memref<8x128xbf16, #tpu.memory_space<vmem>>, %arg3: memref<8x1xf32, #tpu.memory_space<vmem>>, %arg4: memref<1x8x384xf32, #tpu.memory_space<vmem>>, %arg5: memref<4x640xbf16, #tpu.memory_space<vmem>>, %arg6: memref<128x384xbf16, #tpu.memory_space<vmem>>) attributes {dimension_semantics = [#tpu.dimension_semantics<parallel>], iteration_bounds = array<i64: 2>, scalar_prefetch = 0 : i64, scratch_operands = 2 : i64, tpu.core_type = #tpu.core_type<tc>, window_params = [{transform_indices = @transform_0, window_bounds = array<i64: 1, 16, 4, 16>}, {pipeline_mode = #tpu.pipeline_mode<synchronous>, transform_indices = @transform_1, window_bounds = array<i64: 8, 128>}, {pipeline_mode = #tpu.pipeline_mode<synchronous>, transform_indices = @transform_2, window_bounds = array<i64: 8, 1>}, {transform_indices = @transform_3, window_bounds = array<i64: 1, 8, 384>}]} {
    %cst = arith.constant 0.000000e+00 : bf16
    %0 = vector.broadcast %cst : bf16 to vector<4x640xbf16>
    %c0 = arith.constant 0 : index
    %c0_0 = arith.constant 0 : index
    %1 = vector.load %arg5[%c0, %c0_0] : memref<4x640xbf16, #tpu.memory_space<vmem>>, vector<4x640xbf16>
    tpu.vector_store %arg5[%c0, %c0_0], %0 {strides = array<i32>} : memref<4x640xbf16, #tpu.memory_space<vmem>>, vector<4x640xbf16>,
    %c0_1 = arith.constant 0 : index
    %c0_2 = arith.constant 0 : index
    %c0_3 = arith.constant 0 : index
    %c0_4 = arith.constant 0 : index
    %2 = vector.load %arg1[%c0_1, %c0_2, %c0_3, %c0_4] : memref<1x16x4x16xbf16, #tpu.memory_space<vmem>>, vector<1x1x4x16xbf16>
    %3 = vector.shape_cast %2 : vector<1x1x4x16xbf16> to vector<4x16xbf16>
    %c0_5 = arith.constant 0 : index
    %c100 = arith.constant 100 : index
    %4 = vector.load %arg5[%c0_5, %c100] : memref<4x640xbf16, #tpu.memory_space<vmem>>, vector<4x16xbf16>
    tpu.vector_store %arg5[%c0_5, %c100], %3 {strides = array<i32>} : memref<4x640xbf16, #tpu.memory_space<vmem>>, vector<4x16xbf16>,
    %c0_6 = arith.constant 0 : index
    %c1 = arith.constant 1 : index
    %c0_7 = arith.constant 0 : index
    %c0_8 = arith.constant 0 : index
    %5 = vector.load %arg1[%c0_6, %c1, %c0_7, %c0_8] : memref<1x16x4x16xbf16, #tpu.memory_space<vmem>>, vector<1x1x4x16xbf16>
    %6 = vector.shape_cast %5 : vector<1x1x4x16xbf16> to vector<4x16xbf16>
    %c0_9 = arith.constant 0 : index
    %c124 = arith.constant 124 : index
    %7 = vector.load %arg5[%c0_9, %c124] : memref<4x640xbf16, #tpu.memory_space<vmem>>, vector<4x16xbf16>
    tpu.vector_store %arg5[%c0_9, %c124], %6 {strides = array<i32>} : memref<4x640xbf16, #tpu.memory_space<vmem>>, vector<4x16xbf16>,
    %c0_10 = arith.constant 0 : index
    %c2 = arith.constant 2 : index
    %c0_11 = arith.constant 0 : index
    %c0_12 = arith.constant 0 : index
    %8 = vector.load %arg1[%c0_10, %c2, %c0_11, %c0_12] : memref<1x16x4x16xbf16, #tpu.memory_space<vmem>>, vector<1x1x4x16xbf16>
    %9 = vector.shape_cast %8 : vector<1x1x4x16xbf16> to vector<4x16xbf16>
    %c0_13 = arith.constant 0 : index
    %c148 = arith.constant 148 : index
    %10 = vector.load %arg5[%c0_13, %c148] : memref<4x640xbf16, #tpu.memory_space<vmem>>, vector<4x16xbf16>
    tpu.vector_store %arg5[%c0_13, %c148], %9 {strides = array<i32>} : memref<4x640xbf16, #tpu.memory_space<vmem>>, vector<4x16xbf16>,
    %c0_14 = arith.constant 0 : index
    %c3 = arith.constant 3 : index
    %c0_15 = arith.constant 0 : index
    %c0_16 = arith.constant 0 : index
    %11 = vector.load %arg1[%c0_14, %c3, %c0_15, %c0_16] : memref<1x16x4x16xbf16, #tpu.memory_space<vmem>>, vector<1x1x4x16xbf16>
    %12 = vector.shape_cast %11 : vector<1x1x4x16xbf16> to vector<4x16xbf16>
    %c0_17 = arith.constant 0 : index
    %c172 = arith.constant 172 : index
    %13 = vector.load %arg5[%c0_17, %c172] : memref<4x640xbf16, #tpu.memory_space<vmem>>, vector<4x16xbf16>
    tpu.vector_store %arg5[%c0_17, %c172], %12 {strides = array<i32>} : memref<4x640xbf16, #tpu.memory_space<vmem>>, vector<4x16xbf16>,
    %c0_18 = arith.constant 0 : index
    %c4 = arith.constant 4 : index
    %c0_19 = arith.constant 0 : index
    %c0_20 = arith.constant 0 : index
    %14 = vector.load %arg1[%c0_18, %c4, %c0_19, %c0_20] : memref<1x16x4x16xbf16, #tpu.memory_space<vmem>>, vector<1x1x4x16xbf16>
    %15 = vector.shape_cast %14 : vector<1x1x4x16xbf16> to vector<4x16xbf16>
    %c0_21 = arith.constant 0 : index
    %c196 = arith.constant 196 : index
    %16 = vector.load %arg5[%c0_21, %c196] : memref<4x640xbf16, #tpu.memory_space<vmem>>, vector<4x16xbf16>
    tpu.vector_store %arg5[%c0_21, %c196], %15 {strides = array<i32>} : memref<4x640xbf16, #tpu.memory_space<vmem>>, vector<4x16xbf16>,
    %c0_22 = arith.constant 0 : index
    %c5 = arith.constant 5 : index
    %c0_23 = arith.constant 0 : index
    %c0_24 = arith.constant 0 : index
    %17 = vector.load %arg1[%c0_22, %c5, %c0_23, %c0_24] : memref<1x16x4x16xbf16, #tpu.memory_space<vmem>>, vector<1x1x4x16xbf16>
    %18 = vector.shape_cast %17 : vector<1x1x4x16xbf16> to vector<4x16xbf16>
    %c0_25 = arith.constant 0 : index
    %c220 = arith.constant 220 : index
    %19 = vector.load %arg5[%c0_25, %c220] : memref<4x640xbf16, #tpu.memory_space<vmem>>, vector<4x16xbf16>
    tpu.vector_store %arg5[%c0_25, %c220], %18 {strides = array<i32>} : memref<4x640xbf16, #tpu.memory_space<vmem>>, vector<4x16xbf16>,
    %c0_26 = arith.constant 0 : index
    %c6 = arith.constant 6 : index
    %c0_27 = arith.constant 0 : index
    %c0_28 = arith.constant 0 : index
    %20 = vector.load %arg1[%c0_26, %c6, %c0_27, %c0_28] : memref<1x16x4x16xbf16, #tpu.memory_space<vmem>>, vector<1x1x4x16xbf16>
    %21 = vector.shape_cast %20 : vector<1x1x4x16xbf16> to vector<4x16xbf16>
    %c0_29 = arith.constant 0 : index
    %c244 = arith.constant 244 : index
    %22 = vector.load %arg5[%c0_29, %c244] : memref<4x640xbf16, #tpu.memory_space<vmem>>, vector<4x16xbf16>
    tpu.vector_store %arg5[%c0_29, %c244], %21 {strides = array<i32>} : memref<4x640xbf16, #tpu.memory_space<vmem>>, vector<4x16xbf16>,
    %c0_30 = arith.constant 0 : index
    %c7 = arith.constant 7 : index
    %c0_31 = arith.constant 0 : index
    %c0_32 = arith.constant 0 : index
    %23 = vector.load %arg1[%c0_30, %c7, %c0_31, %c0_32] : memref<1x16x4x16xbf16, #tpu.memory_space<vmem>>, vector<1x1x4x16xbf16>
    %24 = vector.shape_cast %23 : vector<1x1x4x16xbf16> to vector<4x16xbf16>
    %c0_33 = arith.constant 0 : index
    %c268 = arith.constant 268 : index
    %25 = vector.load %arg5[%c0_33, %c268] : memref<4x640xbf16, #tpu.memory_space<vmem>>, vector<4x16xbf16>
    tpu.vector_store %arg5[%c0_33, %c268], %24 {strides = array<i32>} : memref<4x640xbf16, #tpu.memory_space<vmem>>, vector<4x16xbf16>,
    %c0_34 = arith.constant 0 : index
    %c8 = arith.constant 8 : index
    %c0_35 = arith.constant 0 : index
    %c0_36 = arith.constant 0 : index
    %26 = vector.load %arg1[%c0_34, %c8, %c0_35, %c0_36] : memref<1x16x4x16xbf16, #tpu.memory_space<vmem>>, vector<1x1x4x16xbf16>
    %27 = vector.shape_cast %26 : vector<1x1x4x16xbf16> to vector<4x16xbf16>
    %c0_37 = arith.constant 0 : index
    %c292 = arith.constant 292 : index
    %28 = vector.load %arg5[%c0_37, %c292] : memref<4x640xbf16, #tpu.memory_space<vmem>>, vector<4x16xbf16>
    tpu.vector_store %arg5[%c0_37, %c292], %27 {strides = array<i32>} : memref<4x640xbf16, #tpu.memory_space<vmem>>, vector<4x16xbf16>,
    %c0_38 = arith.constant 0 : index
    %c9 = arith.constant 9 : index
    %c0_39 = arith.constant 0 : index
    %c0_40 = arith.constant 0 : index
    %29 = vector.load %arg1[%c0_38, %c9, %c0_39, %c0_40] : memref<1x16x4x16xbf16, #tpu.memory_space<vmem>>, vector<1x1x4x16xbf16>
    %30 = vector.shape_cast %29 : vector<1x1x4x16xbf16> to vector<4x16xbf16>
    %c0_41 = arith.constant 0 : index
    %c316 = arith.constant 316 : index
    %31 = vector.load %arg5[%c0_41, %c316] : memref<4x640xbf16, #tpu.memory_space<vmem>>, vector<4x16xbf16>
    tpu.vector_store %arg5[%c0_41, %c316], %30 {strides = array<i32>} : memref<4x640xbf16, #tpu.memory_space<vmem>>, vector<4x16xbf16>,
    %c0_42 = arith.constant 0 : index
    %c10 = arith.constant 10 : index
    %c0_43 = arith.constant 0 : index
    %c0_44 = arith.constant 0 : index
    %32 = vector.load %arg1[%c0_42, %c10, %c0_43, %c0_44] : memref<1x16x4x16xbf16, #tpu.memory_space<vmem>>, vector<1x1x4x16xbf16>
    %33 = vector.shape_cast %32 : vector<1x1x4x16xbf16> to vector<4x16xbf16>
    %c0_45 = arith.constant 0 : index
    %c340 = arith.constant 340 : index
    %34 = vector.load %arg5[%c0_45, %c340] : memref<4x640xbf16, #tpu.memory_space<vmem>>, vector<4x16xbf16>
    tpu.vector_store %arg5[%c0_45, %c340], %33 {strides = array<i32>} : memref<4x640xbf16, #tpu.memory_space<vmem>>, vector<4x16xbf16>,
    %c0_46 = arith.constant 0 : index
    %c11 = arith.constant 11 : index
    %c0_47 = arith.constant 0 : index
    %c0_48 = arith.constant 0 : index
    %35 = vector.load %arg1[%c0_46, %c11, %c0_47, %c0_48] : memref<1x16x4x16xbf16, #tpu.memory_space<vmem>>, vector<1x1x4x16xbf16>
    %36 = vector.shape_cast %35 : vector<1x1x4x16xbf16> to vector<4x16xbf16>
    %c0_49 = arith.constant 0 : index
    %c364 = arith.constant 364 : index
    %37 = vector.load %arg5[%c0_49, %c364] : memref<4x640xbf16, #tpu.memory_space<vmem>>, vector<4x16xbf16>
    tpu.vector_store %arg5[%c0_49, %c364], %36 {strides = array<i32>} : memref<4x640xbf16, #tpu.memory_space<vmem>>, vector<4x16xbf16>,
    %c0_50 = arith.constant 0 : index
    %c12 = arith.constant 12 : index
    %c0_51 = arith.constant 0 : index
    %c0_52 = arith.constant 0 : index
    %38 = vector.load %arg1[%c0_50, %c12, %c0_51, %c0_52] : memref<1x16x4x16xbf16, #tpu.memory_space<vmem>>, vector<1x1x4x16xbf16>
    %39 = vector.shape_cast %38 : vector<1x1x4x16xbf16> to vector<4x16xbf16>
    %c0_53 = arith.constant 0 : index
    %c388 = arith.constant 388 : index
    %40 = vector.load %arg5[%c0_53, %c388] : memref<4x640xbf16, #tpu.memory_space<vmem>>, vector<4x16xbf16>
    tpu.vector_store %arg5[%c0_53, %c388], %39 {strides = array<i32>} : memref<4x640xbf16, #tpu.memory_space<vmem>>, vector<4x16xbf16>,
    %c0_54 = arith.constant 0 : index
    %c13 = arith.constant 13 : index
    %c0_55 = arith.constant 0 : index
    %c0_56 = arith.constant 0 : index
    %41 = vector.load %arg1[%c0_54, %c13, %c0_55, %c0_56] : memref<1x16x4x16xbf16, #tpu.memory_space<vmem>>, vector<1x1x4x16xbf16>
    %42 = vector.shape_cast %41 : vector<1x1x4x16xbf16> to vector<4x16xbf16>
    %c0_57 = arith.constant 0 : index
    %c412 = arith.constant 412 : index
    %43 = vector.load %arg5[%c0_57, %c412] : memref<4x640xbf16, #tpu.memory_space<vmem>>, vector<4x16xbf16>
    tpu.vector_store %arg5[%c0_57, %c412], %42 {strides = array<i32>} : memref<4x640xbf16, #tpu.memory_space<vmem>>, vector<4x16xbf16>,
    %c0_58 = arith.constant 0 : index
    %c14 = arith.constant 14 : index
    %c0_59 = arith.constant 0 : index
    %c0_60 = arith.constant 0 : index
    %44 = vector.load %arg1[%c0_58, %c14, %c0_59, %c0_60] : memref<1x16x4x16xbf16, #tpu.memory_space<vmem>>, vector<1x1x4x16xbf16>
    %45 = vector.shape_cast %44 : vector<1x1x4x16xbf16> to vector<4x16xbf16>
    %c0_61 = arith.constant 0 : index
    %c436 = arith.constant 436 : index
    %46 = vector.load %arg5[%c0_61, %c436] : memref<4x640xbf16, #tpu.memory_space<vmem>>, vector<4x16xbf16>
    tpu.vector_store %arg5[%c0_61, %c436], %45 {strides = array<i32>} : memref<4x640xbf16, #tpu.memory_space<vmem>>, vector<4x16xbf16>,
    %c0_62 = arith.constant 0 : index
    %c15 = arith.constant 15 : index
    %c0_63 = arith.constant 0 : index
    %c0_64 = arith.constant 0 : index
    %47 = vector.load %arg1[%c0_62, %c15, %c0_63, %c0_64] : memref<1x16x4x16xbf16, #tpu.memory_space<vmem>>, vector<1x1x4x16xbf16>
    %48 = vector.shape_cast %47 : vector<1x1x4x16xbf16> to vector<4x16xbf16>
    %c0_65 = arith.constant 0 : index
    %c460 = arith.constant 460 : index
    %49 = vector.load %arg5[%c0_65, %c460] : memref<4x640xbf16, #tpu.memory_space<vmem>>, vector<4x16xbf16>
    tpu.vector_store %arg5[%c0_65, %c460], %48 {strides = array<i32>} : memref<4x640xbf16, #tpu.memory_space<vmem>>, vector<4x16xbf16>,
    %c0_66 = arith.constant 0 : index
    %c0_67 = arith.constant 0 : index
    %50 = vector.load %arg5[%c0_66, %c0_67] : memref<4x640xbf16, #tpu.memory_space<vmem>>, vector<4x384xbf16>
    %c0_68 = arith.constant 0 : index
    %c0_69 = arith.constant 0 : index
    %51 = vector.load %arg6[%c0_68, %c0_69] : memref<128x384xbf16, #tpu.memory_space<vmem>>, vector<4x384xbf16>
    tpu.vector_store %arg6[%c0_68, %c0_69], %50 {strides = array<i32>} : memref<128x384xbf16, #tpu.memory_space<vmem>>, vector<4x384xbf16>,
    %c0_70 = arith.constant 0 : index
    %c4_71 = arith.constant 4 : index
    %52 = vector.load %arg5[%c0_70, %c4_71] : memref<4x640xbf16, #tpu.memory_space<vmem>>, vector<4x384xbf16>
    %c4_72 = arith.constant 4 : index
    %c0_73 = arith.constant 0 : index
    %53 = vector.load %arg6[%c4_72, %c0_73] : memref<128x384xbf16, #tpu.memory_space<vmem>>, vector<4x384xbf16>
    tpu.vector_store %arg6[%c4_72, %c0_73], %52 {strides = array<i32>} : memref<128x384xbf16, #tpu.memory_space<vmem>>, vector<4x384xbf16>,
    %c0_74 = arith.constant 0 : index
    %c8_75 = arith.constant 8 : index
    %54 = vector.load %arg5[%c0_74, %c8_75] : memref<4x640xbf16, #tpu.memory_space<vmem>>, vector<4x384xbf16>
    %c8_76 = arith.constant 8 : index
    %c0_77 = arith.constant 0 : index
    %55 = vector.load %arg6[%c8_76, %c0_77] : memref<128x384xbf16, #tpu.memory_space<vmem>>, vector<4x384xbf16>
    tpu.vector_store %arg6[%c8_76, %c0_77], %54 {strides = array<i32>} : memref<128x384xbf16, #tpu.memory_space<vmem>>, vector<4x384xbf16>,
    %c0_78 = arith.constant 0 : index
    %c50 = arith.constant 50 : index
    %56 = vector.load %arg5[%c0_78, %c50] : memref<4x640xbf16, #tpu.memory_space<vmem>>, vector<4x384xbf16>
    %c12_79 = arith.constant 12 : index
    %c0_80 = arith.constant 0 : index
    %57 = vector.load %arg6[%c12_79, %c0_80] : memref<128x384xbf16, #tpu.memory_space<vmem>>, vector<4x384xbf16>
    tpu.vector_store %arg6[%c12_79, %c0_80], %56 {strides = array<i32>} : memref<128x384xbf16, #tpu.memory_space<vmem>>, vector<4x384xbf16>,
    %c0_81 = arith.constant 0 : index
    %c52 = arith.constant 52 : index
    %58 = vector.load %arg5[%c0_81, %c52] : memref<4x640xbf16, #tpu.memory_space<vmem>>, vector<4x384xbf16>
    %c16 = arith.constant 16 : index
    %c0_82 = arith.constant 0 : index
    %59 = vector.load %arg6[%c16, %c0_82] : memref<128x384xbf16, #tpu.memory_space<vmem>>, vector<4x384xbf16>
    tpu.vector_store %arg6[%c16, %c0_82], %58 {strides = array<i32>} : memref<128x384xbf16, #tpu.memory_space<vmem>>, vector<4x384xbf16>,
    %c0_83 = arith.constant 0 : index
    %c54 = arith.constant 54 : index
    %60 = vector.load %arg5[%c0_83, %c54] : memref<4x640xbf16, #tpu.memory_space<vmem>>, vector<4x384xbf16>
    %c20 = arith.constant 20 : index
    %c0_84 = arith.constant 0 : index
    %61 = vector.load %arg6[%c20, %c0_84] : memref<128x384xbf16, #tpu.memory_space<vmem>>, vector<4x384xbf16>
    tpu.vector_store %arg6[%c20, %c0_84], %60 {strides = array<i32>} : memref<128x384xbf16, #tpu.memory_space<vmem>>, vector<4x384xbf16>,
    %c0_85 = arith.constant 0 : index
    %c75 = arith.constant 75 : index
    %62 = vector.load %arg5[%c0_85, %c75] : memref<4x640xbf16, #tpu.memory_space<vmem>>, vector<4x384xbf16>
    %c24 = arith.constant 24 : index
    %c0_86 = arith.constant 0 : index
    %63 = vector.load %arg6[%c24, %c0_86] : memref<128x384xbf16, #tpu.memory_space<vmem>>, vector<4x384xbf16>
    tpu.vector_store %arg6[%c24, %c0_86], %62 {strides = array<i32>} : memref<128x384xbf16, #tpu.memory_space<vmem>>, vector<4x384xbf16>,
    %c0_87 = arith.constant 0 : index
    %c76 = arith.constant 76 : index
    %64 = vector.load %arg5[%c0_87, %c76] : memref<4x640xbf16, #tpu.memory_space<vmem>>, vector<4x384xbf16>
    %c28 = arith.constant 28 : index
    %c0_88 = arith.constant 0 : index
    %65 = vector.load %arg6[%c28, %c0_88] : memref<128x384xbf16, #tpu.memory_space<vmem>>, vector<4x384xbf16>
    tpu.vector_store %arg6[%c28, %c0_88], %64 {strides = array<i32>} : memref<128x384xbf16, #tpu.memory_space<vmem>>, vector<4x384xbf16>,
    %c0_89 = arith.constant 0 : index
    %c77 = arith.constant 77 : index
    %66 = vector.load %arg5[%c0_89, %c77] : memref<4x640xbf16, #tpu.memory_space<vmem>>, vector<4x384xbf16>
    %c32 = arith.constant 32 : index
    %c0_90 = arith.constant 0 : index
    %67 = vector.load %arg6[%c32, %c0_90] : memref<128x384xbf16, #tpu.memory_space<vmem>>, vector<4x384xbf16>
    tpu.vector_store %arg6[%c32, %c0_90], %66 {strides = array<i32>} : memref<128x384xbf16, #tpu.memory_space<vmem>>, vector<4x384xbf16>,
    %c0_91 = arith.constant 0 : index
    %c96 = arith.constant 96 : index
    %68 = vector.load %arg5[%c0_91, %c96] : memref<4x640xbf16, #tpu.memory_space<vmem>>, vector<4x384xbf16>
    %c36 = arith.constant 36 : index
    %c0_92 = arith.constant 0 : index
    %69 = vector.load %arg6[%c36, %c0_92] : memref<128x384xbf16, #tpu.memory_space<vmem>>, vector<4x384xbf16>
    tpu.vector_store %arg6[%c36, %c0_92], %68 {strides = array<i32>} : memref<128x384xbf16, #tpu.memory_space<vmem>>, vector<4x384xbf16>,
    %c0_93 = arith.constant 0 : index
    %c98 = arith.constant 98 : index
    %70 = vector.load %arg5[%c0_93, %c98] : memref<4x640xbf16, #tpu.memory_space<vmem>>, vector<4x384xbf16>
    %c40 = arith.constant 40 : index
    %c0_94 = arith.constant 0 : index
    %71 = vector.load %arg6[%c40, %c0_94] : memref<128x384xbf16, #tpu.memory_space<vmem>>, vector<4x384xbf16>
    tpu.vector_store %arg6[%c40, %c0_94], %70 {strides = array<i32>} : memref<128x384xbf16, #tpu.memory_space<vmem>>, vector<4x384xbf16>,
    %c0_95 = arith.constant 0 : index
    %c99 = arith.constant 99 : index
    %72 = vector.load %arg5[%c0_95, %c99] : memref<4x640xbf16, #tpu.memory_space<vmem>>, vector<4x384xbf16>
    %c44 = arith.constant 44 : index
    %c0_96 = arith.constant 0 : index
    %73 = vector.load %arg6[%c44, %c0_96] : memref<128x384xbf16, #tpu.memory_space<vmem>>, vector<4x384xbf16>
    tpu.vector_store %arg6[%c44, %c0_96], %72 {strides = array<i32>} : memref<128x384xbf16, #tpu.memory_space<vmem>>, vector<4x384xbf16>,
    %c0_97 = arith.constant 0 : index
    %c100_98 = arith.constant 100 : index
    %74 = vector.load %arg5[%c0_97, %c100_98] : memref<4x640xbf16, #tpu.memory_space<vmem>>, vector<4x384xbf16>
    %c48 = arith.constant 48 : index
    %c0_99 = arith.constant 0 : index
    %75 = vector.load %arg6[%c48, %c0_99] : memref<128x384xbf16, #tpu.memory_space<vmem>>, vector<4x384xbf16>
    tpu.vector_store %arg6[%c48, %c0_99], %74 {strides = array<i32>} : memref<128x384xbf16, #tpu.memory_space<vmem>>, vector<4x384xbf16>,
    %c0_100 = arith.constant 0 : index
    %c101 = arith.constant 101 : index
    %76 = vector.load %arg5[%c0_100, %c101] : memref<4x640xbf16, #tpu.memory_space<vmem>>, vector<4x384xbf16>
    %c52_101 = arith.constant 52 : index
    %c0_102 = arith.constant 0 : index
    %77 = vector.load %arg6[%c52_101, %c0_102] : memref<128x384xbf16, #tpu.memory_space<vmem>>, vector<4x384xbf16>
    tpu.vector_store %arg6[%c52_101, %c0_102], %76 {strides = array<i32>} : memref<128x384xbf16, #tpu.memory_space<vmem>>, vector<4x384xbf16>,
    %c0_103 = arith.constant 0 : index
    %c102 = arith.constant 102 : index
    %78 = vector.load %arg5[%c0_103, %c102] : memref<4x640xbf16, #tpu.memory_space<vmem>>, vector<4x384xbf16>
    %c56 = arith.constant 56 : index
    %c0_104 = arith.constant 0 : index
    %79 = vector.load %arg6[%c56, %c0_104] : memref<128x384xbf16, #tpu.memory_space<vmem>>, vector<4x384xbf16>
    tpu.vector_store %arg6[%c56, %c0_104], %78 {strides = array<i32>} : memref<128x384xbf16, #tpu.memory_space<vmem>>, vector<4x384xbf16>,
    %c0_105 = arith.constant 0 : index
    %c104 = arith.constant 104 : index
    %80 = vector.load %arg5[%c0_105, %c104] : memref<4x640xbf16, #tpu.memory_space<vmem>>, vector<4x384xbf16>
    %c60 = arith.constant 60 : index
    %c0_106 = arith.constant 0 : index
    %81 = vector.load %arg6[%c60, %c0_106] : memref<128x384xbf16, #tpu.memory_space<vmem>>, vector<4x384xbf16>
    tpu.vector_store %arg6[%c60, %c0_106], %80 {strides = array<i32>} : memref<128x384xbf16, #tpu.memory_space<vmem>>, vector<4x384xbf16>,
    %c0_107 = arith.constant 0 : index
    %c123 = arith.constant 123 : index
    %82 = vector.load %arg5[%c0_107, %c123] : memref<4x640xbf16, #tpu.memory_space<vmem>>, vector<4x384xbf16>
    %c64 = arith.constant 64 : index
    %c0_108 = arith.constant 0 : index
    %83 = vector.load %arg6[%c64, %c0_108] : memref<128x384xbf16, #tpu.memory_space<vmem>>, vector<4x384xbf16>
    tpu.vector_store %arg6[%c64, %c0_108], %82 {strides = array<i32>} : memref<128x384xbf16, #tpu.memory_space<vmem>>, vector<4x384xbf16>,
    %c0_109 = arith.constant 0 : index
    %c124_110 = arith.constant 124 : index
    %84 = vector.load %arg5[%c0_109, %c124_110] : memref<4x640xbf16, #tpu.memory_space<vmem>>, vector<4x384xbf16>
    %c68 = arith.constant 68 : index
    %c0_111 = arith.constant 0 : index
    %85 = vector.load %arg6[%c68, %c0_111] : memref<128x384xbf16, #tpu.memory_space<vmem>>, vector<4x384xbf16>
    tpu.vector_store %arg6[%c68, %c0_111], %84 {strides = array<i32>} : memref<128x384xbf16, #tpu.memory_space<vmem>>, vector<4x384xbf16>,
    %c0_112 = arith.constant 0 : index
    %c125 = arith.constant 125 : index
    %86 = vector.load %arg5[%c0_112, %c125] : memref<4x640xbf16, #tpu.memory_space<vmem>>, vector<4x384xbf16>
    %c72 = arith.constant 72 : index
    %c0_113 = arith.constant 0 : index
    %87 = vector.load %arg6[%c72, %c0_113] : memref<128x384xbf16, #tpu.memory_space<vmem>>, vector<4x384xbf16>
    tpu.vector_store %arg6[%c72, %c0_113], %86 {strides = array<i32>} : memref<128x384xbf16, #tpu.memory_space<vmem>>, vector<4x384xbf16>,
    %c0_114 = arith.constant 0 : index
    %c146 = arith.constant 146 : index
    %88 = vector.load %arg5[%c0_114, %c146] : memref<4x640xbf16, #tpu.memory_space<vmem>>, vector<4x384xbf16>
    %c76_115 = arith.constant 76 : index
    %c0_116 = arith.constant 0 : index
    %89 = vector.load %arg6[%c76_115, %c0_116] : memref<128x384xbf16, #tpu.memory_space<vmem>>, vector<4x384xbf16>
    tpu.vector_store %arg6[%c76_115, %c0_116], %88 {strides = array<i32>} : memref<128x384xbf16, #tpu.memory_space<vmem>>, vector<4x384xbf16>,
    %c0_117 = arith.constant 0 : index
    %c148_118 = arith.constant 148 : index
    %90 = vector.load %arg5[%c0_117, %c148_118] : memref<4x640xbf16, #tpu.memory_space<vmem>>, vector<4x384xbf16>
    %c80 = arith.constant 80 : index
    %c0_119 = arith.constant 0 : index
    %91 = vector.load %arg6[%c80, %c0_119] : memref<128x384xbf16, #tpu.memory_space<vmem>>, vector<4x384xbf16>
    tpu.vector_store %arg6[%c80, %c0_119], %90 {strides = array<i32>} : memref<128x384xbf16, #tpu.memory_space<vmem>>, vector<4x384xbf16>,
    %c0_120 = arith.constant 0 : index
    %c150 = arith.constant 150 : index
    %92 = vector.load %arg5[%c0_120, %c150] : memref<4x640xbf16, #tpu.memory_space<vmem>>, vector<4x384xbf16>
    %c84 = arith.constant 84 : index
    %c0_121 = arith.constant 0 : index
    %93 = vector.load %arg6[%c84, %c0_121] : memref<128x384xbf16, #tpu.memory_space<vmem>>, vector<4x384xbf16>
    tpu.vector_store %arg6[%c84, %c0_121], %92 {strides = array<i32>} : memref<128x384xbf16, #tpu.memory_space<vmem>>, vector<4x384xbf16>,
    %c0_122 = arith.constant 0 : index
    %c192 = arith.constant 192 : index
    %94 = vector.load %arg5[%c0_122, %c192] : memref<4x640xbf16, #tpu.memory_space<vmem>>, vector<4x384xbf16>
    %c88 = arith.constant 88 : index
    %c0_123 = arith.constant 0 : index
    %95 = vector.load %arg6[%c88, %c0_123] : memref<128x384xbf16, #tpu.memory_space<vmem>>, vector<4x384xbf16>
    tpu.vector_store %arg6[%c88, %c0_123], %94 {strides = array<i32>} : memref<128x384xbf16, #tpu.memory_space<vmem>>, vector<4x384xbf16>,
    %c0_124 = arith.constant 0 : index
    %c196_125 = arith.constant 196 : index
    %96 = vector.load %arg5[%c0_124, %c196_125] : memref<4x640xbf16, #tpu.memory_space<vmem>>, vector<4x384xbf16>
    %c92 = arith.constant 92 : index
    %c0_126 = arith.constant 0 : index
    %97 = vector.load %arg6[%c92, %c0_126] : memref<128x384xbf16, #tpu.memory_space<vmem>>, vector<4x384xbf16>
    tpu.vector_store %arg6[%c92, %c0_126], %96 {strides = array<i32>} : memref<128x384xbf16, #tpu.memory_space<vmem>>, vector<4x384xbf16>,
    %c0_127 = arith.constant 0 : index
    %c200 = arith.constant 200 : index
    %98 = vector.load %arg5[%c0_127, %c200] : memref<4x640xbf16, #tpu.memory_space<vmem>>, vector<4x384xbf16>
    %c96_128 = arith.constant 96 : index
    %c0_129 = arith.constant 0 : index
    %99 = vector.load %arg6[%c96_128, %c0_129] : memref<128x384xbf16, #tpu.memory_space<vmem>>, vector<4x384xbf16>
    tpu.vector_store %arg6[%c96_128, %c0_129], %98 {strides = array<i32>} : memref<128x384xbf16, #tpu.memory_space<vmem>>, vector<4x384xbf16>,
    %cst_130 = arith.constant 0.000000e+00 : bf16
    %100 = vector.broadcast %cst_130 : bf16 to vector<28x384xbf16>
    %c100_131 = arith.constant 100 : index
    %c0_132 = arith.constant 0 : index
    %101 = vector.load %arg6[%c100_131, %c0_132] : memref<128x384xbf16, #tpu.memory_space<vmem>>, vector<28x384xbf16>
    tpu.vector_store %arg6[%c100_131, %c0_132], %100 {strides = array<i32>} : memref<128x384xbf16, #tpu.memory_space<vmem>>, vector<28x384xbf16>,
    %c0_133 = arith.constant 0 : index
    %c0_134 = arith.constant 0 : index
    %102 = vector.load %arg2[%c0_133, %c0_134] : memref<8x128xbf16, #tpu.memory_space<vmem>>, vector<8x128xbf16>
    %c0_135 = arith.constant 0 : index
    %c0_136 = arith.constant 0 : index
    %103 = vector.load %arg6[%c0_135, %c0_136] : memref<128x384xbf16, #tpu.memory_space<vmem>>, vector<128x384xbf16>
    %cst_137 = arith.constant dense<0.000000e+00> : vector<8x384xf32>
    %104 = tpu.matmul %102, %103, %cst_137 {dimension_numbers = #tpu.dot_dimension_numbers<[1], [0], [0], [1], [0, 0, 1, 1], [], []>} : vector<8x128xbf16>, vector<128x384xbf16>, vector<8x384xf32> -> vector<8x384xf32>
    %c0_138 = arith.constant 0 : index
    %c0_139 = arith.constant 0 : index
    %105 = vector.load %arg3[%c0_138, %c0_139] : memref<8x1xf32, #tpu.memory_space<vmem>>, vector<8x1xf32>
    %106 = vector.broadcast %105 : vector<8x1xf32> to vector<8x384xf32>
    %107 = arith.addf %104, %106 : vector<8x384xf32>
    %c0_140 = arith.constant 0 : index
    %c0_141 = arith.constant 0 : index
    %c0_142 = arith.constant 0 : index
    %108 = vector.load %arg4[%c0_140, %c0_141, %c0_142] : memref<1x8x384xf32, #tpu.memory_space<vmem>>, vector<1x8x384xf32>
    %109 = vector.shape_cast %108 : vector<1x8x384xf32> to vector<8x384xf32>
    %110 = vector.shape_cast %107 : vector<8x384xf32> to vector<1x8x384xf32>
    tpu.vector_store %arg4[%c0_140, %c0_141, %c0_142], %110 {strides = array<i32>} : memref<1x8x384xf32, #tpu.memory_space<vmem>>, vector<1x8x384xf32>,
    return
  }
  func.func @transform_0(%arg0: i32) -> (i32, i32, i32, i32) {
    %c0_i32 = arith.constant 0 : i32
    %c0_i32_0 = arith.constant 0 : i32
    %c0_i32_1 = arith.constant 0 : i32
    %c0_i32_2 = arith.constant 0 : i32
    return %arg0, %c0_i32, %c0_i32_0, %c0_i32_1 : i32, i32, i32, i32
  }
  func.func @transform_1(%arg0: i32) -> (i32, i32) {
    %c0_i32 = arith.constant 0 : i32
    %c0_i32_0 = arith.constant 0 : i32
    %c0_i32_1 = arith.constant 0 : i32
    return %c0_i32, %c0_i32_0 : i32, i32
  }
  func.func @transform_2(%arg0: i32) -> (i32, i32) {
    %c0_i32 = arith.constant 0 : i32
    %c0_i32_0 = arith.constant 0 : i32
    %c0_i32_1 = arith.constant 0 : i32
    return %c0_i32, %c0_i32_0 : i32, i32
  }
  func.func @transform_3(%arg0: i32) -> (i32, i32, i32) {
    %c0_i32 = arith.constant 0 : i32
    %c0_i32_0 = arith.constant 0 : i32
    %c0_i32_1 = arith.constant 0 : i32
    return %arg0, %c0_i32, %c0_i32_0 : i32, i32, i32
  }
}

</mosaic_0001>

<bundles_post_ra>
// kernel: tpu_custom_call.1
= control target key start
LH: loop header
LB: loop body
LE: loop exit
PB: predicated region body
PF: predicated region fallthrough
CT: control target
= control target key end

     0   :  { %8 = vsyncpa [#allocation5], 0  ;;  %s1925_s0 = inlined_call_operand.hbm [shape: bf16[2,16,4,16], index: 0, kind: input, shape index: {}]   ;;  %s1926_s1 = inlined_call_operand.vmem [shape: bf16[8,128], index: 1, kind: input, shape index: {}]   ;;  %s1927_s2 = inlined_call_operand.vmem [shape: f32[8,1], index: 2, kind: input, shape index: {}]   ;;  %s1928_s3 = inlined_call_operand.hbm [shape: f32[2,8,384], index: 3, kind: output, shape index: {}]  }
   0x1   :  { %10 = vsyncpa [#allocation5 + $0x1], 0 }
   0x2   :  { %11 = vsyncpa [#allocation6], 0 }
   0x3   :  { %13 = vsyncpa [#allocation6 + $0x1], 0  ;;  %s1547_s12 = smov 0   ;;  %s1549_s13 = smov 0  }
   0x4   :  { %s1551_s14 = smov 0   ;;  %s1553_s15 = smov 0  }
   0x5 LB: > { %s1568_s16 = sadd.s32 4294967295, %s1489_s15   ;;  %s1160_s17 = sadd.s32 4294967294, %s1489_s15   ;;  %s1489_s15 = sphi %s1553_s15, %s1938_s15   ;;  %s1485_s14 = sphi %s1551_s14, %s1937_s14   ;;  %s1481_s13 = sphi %s1549_s13, %s1936_s13   ;;  %s1477_s12 = sphi %s1547_s12, %s1935_s12  }
   0x6   : > { %s1572_s18 = sadd.s32 1, %s1489_s15   ;;  %s26_s19 = sadd.s32 1, %s1485_s14 }
   0x7   : > { %s23_s20 = ssub.s32 %s1489_s15, %s1572_s18  ;;  %p33_p0 = scmp.ne.s32.totalorder %s1485_s14, %s1481_s13 }
   0x8   : > { %p24_p1 = scmp.eq.s32.totalorder %s23_s20, 0  ;;  %p34_p2 = scmp.eq.s32.totalorder %s1489_s15, 0 }
   0x9   : > { %p39_p3 = scmp.ne.s32.totalorder %s1481_s13, %s1477_s12  ;;  %p40_p4 = scmp.eq.s32.totalorder %s1568_s16, 0 }
   0xa   : > { %s1584_s21 = scalar_select %p24_p1, %s1485_s14, %s26_s19  }
   0xb   : > { %p1586_p5 = por %p34_p2, %p33_p0  ;;  %p1590_p6 = por %p40_p4, %p39_p3 }
   0xc   : > { %p105_p7 = scmp.eq.s32.totalorder %s1568_s16, 1  ;;  %p111_p8 = scmp.eq.s32.totalorder %s1160_s17, 1 }
   0xd   : > { %p1321_p10 = scmp.lt.s32.totalorder %s1489_s15, 2  ;;  %s137_s26 = sand.u32 1, %s1485_s14  }
   0xe   : > { %p1597_p11 = por %p105_p7, %p33_p0  ;;  %p1601_p12 = por %p111_p8, %p39_p3 }
   0xf   : > { %s1282_s27 = sshll.u32 %s1489_s15, 5  ;;  %s1163_s28 = sshll.u32 %s137_s26, 5 }
  0x10   : > { %s146_s4 = scalar_lea.hbm %s1925_s0, %s1282_s27  ;;  %s141_s6 = scalar_lea.vmem [#allocation4], %s1163_s28 }
  0x11   : > { %s147_s5 = sshll.u32 %s146_s4, 4  ;;  %s149_s7 = sshll.u32 %s141_s6, 4  ;;  %s148_s5 = int_to_ptr.hbm [resolvable:$true] %s147_s5  ;;  %s150_s7 = int_to_ptr.vmem [resolvable:$true] %s149_s7 }
  0x12   : > { %p1612_p13 = pnand %p1321_p10, %p1586_p5  ;;  %p1166_p0 = scmp.ge.s32.totalorder %s1489_s15, 1 }
  0x13   : > { %p157_p1 = scmp.lt.s32.totalorder %s1489_s15, 3  ;;  %s138_s9 = scalar_lea.sflag [#allocation5], %s137_s26 }
  0x14   : > { %s1393_s10 = sshra.s32 %s148_s5, 4  ;;  %p1397_p3 = pneg %p1612_p13  ;;  %s1394_s10 = int_to_ptr.hbm [resolvable:$true] %s1393_s10 }
  0x15   : > { %s1395_s11 = scalar_lea.hbm %s1394_s10, 32  ;;  %s1400_s20 = scalar_lea.hbm %s1925_s0, 64 }
  0x16   : > { %p1396_p2 = scmp.ne.s32.totalorder %s1394_s10, %s1395_s11  ;;  %p1401_p5 = scmp.lt.s32.totalorder %s1394_s10, %s1925_s0 }
  0x17   : > { %p1402_p8 = scmp.lt.s32.totalorder %s1400_s20, %s1395_s11 }
  0x18   : > { %p1398_p4 = pnand %p1397_p3, %p1396_p2 }
  0x19   : > { %p1403_p10 = por %p1402_p8, %p1401_p5 }
  0x1a   : > { %p1399_p7 = pneg %p1398_p4 }
  0x1c   : > { %p1404_p9 = pnand %p1403_p10, %p1399_p7 }
  0x1e   : > { %1407 = shalt.err (!%p1404_p9)
}
  0x1f   : > { %s1491_s26 = smov 32   ;;  %s1492_s28 = smov 2  }
  0x20   : > { %1316 = dma.hbm_to_vmem [thread:$0]  (!%p1612_p13), %s148_s5, 512, %s150_s7, %s138_s9, %s1491_s26, %s1491_s26, %s1492_s28  }
  0x21   : > { %p158_p2 = pnand %p1166_p0, %p157_p1 }
  0x22   : > { %s1633_s29 = sand.u32 (!%p158_p2), 1, %s1481_s13  }
  0x23   : > { %161 = sbr.rel (%p158_p2) target bundleno = 696 (0x2b8), region = 32  ;;  %s1167_s30 = sshll.u32 (!%p158_p2), %s1633_s29, 5 }
  0x24   : > { %s164_s4 = scalar_lea.sflag (!%p158_p2), [#allocation5], %s1633_s29  ;;  %s1637_s6 = scalar_lea.vmem (!%p158_p2), [#allocation4], %s1167_s30 }
  0x28   : > { %1468 = dma.done.wait (%p1590_p6), %s164_s4, 512  }
  0x29   : > { %1470 = vsyncadd (%p1590_p6), %s164_s4, 4294966784  ;;  %v1168_v0 = vld [vmem:[%s1637_s6 + $0x2] sm:$0x3]  ;;  %v1169_v1 = vld [vmem:[%s1637_s6 + $0x4] sm:$0x3]  ;;  %s1493_s5 = smov 124  }
  0x2a   : > { %204 = vrot.lane.b32.xlu0 %v1168_v0, %s1493_s5  ;;  %s1494_s7 = smov 20   ;;  %v1173_v2 = vld [vmem:[%s1637_s6 + $0xc] sm:$0x3]  ;;  %s1495_s8 = smov 116   ;;  %v194_v3 = vld [vmem:[%s1637_s6] sm:$0x3] }
  0x2b   : > { %217 = vrot.lane.b32.xlu1 %v1169_v1, %s1494_s7  ;;  %249 = vrot.lane.b32.xlu2 %v1173_v2, %s1495_s8  ;;  %v1170_v4 = vld [vmem:[%s1637_s6 + $0x6] sm:$0x3]  ;;  %s1496_s23 = smov 100   ;;  %s1497_s9 = smov 44   ;;  %v1171_v5 = vld [vmem:[%s1637_s6 + $0x8] sm:$0x3] }
  0x2c   : > { %s1498_s10 = smov 68   ;;  %v1172_v6 = vld [vmem:[%s1637_s6 + $0xa] sm:$0x3]  ;;  %v1174_v7 = vld [vmem:[%s1637_s6 + $0xe] sm:$0x3]  ;;  %s1499_s11 = smov 92  }
  0x2d   : > { %s1500_s17 = smov 12   ;;  %v1175_v8 = vld [vmem:[%s1637_s6 + $0x10] sm:$0x3]  ;;  %s1501_s19 = smov 36   ;;  %v1176_v9 = vld [vmem:[%s1637_s6 + $0x12] sm:$0x3] }
  0x2e   : > { %v1177_v10 = vld [vmem:[%s1637_s6 + $0x14] sm:$0x3]  ;;  %s1502_s20 = smov 60   ;;  %s1503_s22 = smov 84   ;;  %v1178_v11 = vld [vmem:[%s1637_s6 + $0x16] sm:$0x3] }
  0x2f   : > { %s1504_s27 = smov 108   ;;  %v1179_v12 = vld [vmem:[%s1637_s6 + $0x18] sm:$0x3]  ;;  %v1180_v13 = vld [vmem:[%s1637_s6 + $0x1a] sm:$0x3]  ;;  %s1505_s26 = smov 4  }
  0x30   : > { %s1506_s28 = smov 28   ;;  %v1181_v14 = vld [vmem:[%s1637_s6 + $0x1c] sm:$0x3]  ;;  %s1507_s30 = smov 52   ;;  %v1182_v15 = vld [vmem:[%s1637_s6 + $0x1e] sm:$0x3] }
  0x31   : > { %s1508_s4 = smov 76   ;;  %v1509_v16 = vmov 0   ;;  %vm210_vm0 = vcmask 1042400   ;;  %vm211_vm1 = vcmask 93186   ;;  %vm207_vm2 = vcmask 1014784   ;;  %s1510_s6 = smov 74  }
  0x32   : > { %196 = vrot.lane.b32.xlu0 %v194_v3, %s1496_s23  ;;  %192 = vst [vmem:[#allocation2] sm:$0xff] %v1509_v16  ;;  %1391 = vset.pattern.permute.xlu1 %v1509_v16  ;;  %vm199_vm3 = vcmask 943904   ;;  %vm212_vm4 = vmor %vm211_vm1, %vm210_vm0  ;;  %vm220_vm5 = vcmask 287904   ;;  %vm228_vm6 = vcmask 484704   ;;  %vm236_vm7 = vcmask 681504   ;;  %s1511_s7 = smov 53  }
  0x33   : > { %225 = vrot.lane.b32.xlu1 %v1170_v4, %s1497_s9  ;;  %233 = vrot.lane.b32.xlu2 %v1171_v5, %s1498_s10  ;;  %193 = vst [vmem:[#allocation2 + $0x8] sm:$0x3] %v1509_v16  ;;  %vm255_vm8 = vcmask 1042336   ;;  %vm256_vm9 = vcmask 27650   ;;  %vm252_vm10 = vcmask 949248   ;;  %vm244_vm11 = vcmask 878304  }
  0x34   : > { %1392 = vset.pattern.permute.xlu0 %v1509_v16  ;;  %856 = vst [vmem:[#allocation3 + $0x90] sm:$0xcc] %v1509_v16  ;;  %vm257_vm12 = vmor %vm256_vm9, %vm255_vm8  ;;  %vm265_vm13 = vcmask 222304   ;;  %vm273_vm14 = vcmask 419104   ;;  %vm281_vm15 = vcmask 615904   ;;  %vm289_vm0 = vcmask 812704  }
  0x35   : > { %857 = vst [vmem:[#allocation3 + $0x98] sm:$0xc] %v1509_v16  ;;  %vm297_vm1 = vcmask 1009504   ;;  %s1512_s8 = smov 51   ;;  %s1513_s23 = smov 32   ;;  %vm419_vm8 = vcmask 621568  }
  0x36   : > { %858 = vst [vmem:[#allocation3 + $0x9c] sm:$0xff] %v1509_v16  ;;  %s1514_s9 = smov 30   ;;  %s1515_s10 = smov 29   ;;  %vm505_vm9 = vcmask 416768  }
  0x37   : > { %859 = vst [vmem:[#allocation3 + $0xa4] sm:$0xf] %v1509_v16 }
  0x38   : > { %860 = vst [vmem:[#allocation3 + $0xa8] sm:$0xff] %v1509_v16 }
  0x39   : > { %861 = vst [vmem:[#allocation3 + $0xb0] sm:$0xf] %v1509_v16 }
  0x3a   : > { %241 = vrot.lane.b32.xlu0 %v1172_v6, %s1499_s11  ;;  %862 = vst [vmem:[#allocation3 + $0xb4] sm:$0xff] %v1509_v16  ;;  %s1516_s11 = smov 27  }
  0x3b   : > { %262 = vrot.lane.b32.xlu1 %v1174_v7, %s1500_s17  ;;  %270 = vrot.lane.b32.xlu2 %v1175_v8, %s1501_s19  ;;  %863 = vst [vmem:[#allocation3 + $0xbc] sm:$0xf] %v1509_v16  ;;  %s1517_s17 = smov 26   ;;  %s1518_s19 = smov 24  }
  0x42   : > { %278 = vrot.lane.b32.xlu0 %v1176_v9, %s1502_s20 }
  0x43   : > { %286 = vrot.lane.b32.xlu1 %v1177_v10, %s1503_s22  ;;  %294 = vrot.lane.b32.xlu2 %v1178_v11, %s1504_s27  ;;  %s1519_s22 = smov 5  }
  0x4a   : > { %302 = vrot.lane.b32.xlu0 %v1179_v12, %s1505_s26 }
  0x4b   : > { %310 = vrot.lane.b32.xlu1 %v1180_v13, %s1506_s28  ;;  %318 = vrot.lane.b32.xlu2 %v1181_v14, %s1507_s30 }
  0x52   : > { %326 = vrot.lane.b32.xlu0 %v1182_v15, %s1508_s4 }
  0x85   : > { %v250_v17 = vpop.permute.xlu2 %249 }
  0x86   : > { %v251_v25 = vrot.slane %v250_v17, 6 }
  0x88   : > { %v253_v29 = vsel %vm252_vm10, %v251_v25, %v250_v17  ;;  %vm462_vm10 = vcmask 433152  }
  0x8d   : > { %v234_v20 = vpop.permute.xlu2 %233 }
  0x95   : > { %v271_v26 = vpop.permute.xlu2 %270 }
  0x9c   : > { %v205_v18 = vpop.permute.xlu0 %204 }
  0x9d   : > { %v218_v19 = vpop.permute.xlu1 %217  ;;  %v206_v21 = vrot.slane %v205_v18, 6  ;;  %v295_v30 = vpop.permute.xlu2 %294 }
  0x9f   : > { %v208_v24 = vsel %vm207_vm2, %v206_v21, %v205_v18 }
  0xa4   : > { %v197_v22 = vpop.permute.xlu0 %196 }
  0xa5   : > { %v226_v23 = vpop.permute.xlu1 %225  ;;  %200 = vst.msk [vmem:[#allocation2] sm:$0x3] %vm199_vm3, %v197_v22  ;;  %vm305_vm3 = vcmask 156704   ;;  %v319_v35 = vpop.permute.xlu2 %318 }
  0xa6   : > { %213 = vst.msk [vmem:[#allocation2] sm:$0xf] %vm212_vm4, %v208_v24  ;;  %vm313_vm4 = vcmask 353504  }
  0xa7   : > { %221 = vst.msk [vmem:[#allocation2 + $0x2] sm:$0x3] %vm220_vm5, %v218_v19  ;;  %vm321_vm5 = vcmask 550304  }
  0xa8   : > { %229 = vst.msk [vmem:[#allocation2 + $0x2] sm:$0x3] %vm228_vm6, %v226_v23  ;;  %vm329_vm6 = vcmask 747104  }
  0xa9   : > { %237 = vst.msk [vmem:[#allocation2 + $0x2] sm:$0x3] %vm236_vm7, %v234_v20  ;;  %vm441_vm7 = vcmask 605184  }
  0xac   : > { %v242_v27 = vpop.permute.xlu0 %241 }
  0xad   : > { %v263_v28 = vpop.permute.xlu1 %262  ;;  %245 = vst.msk [vmem:[#allocation2 + $0x2] sm:$0x3] %vm244_vm11, %v242_v27  ;;  %vm354_vm11 = vcmask 1043456  }
  0xae   : > { %258 = vst.msk [vmem:[#allocation2 + $0x2] sm:$0xf] %vm257_vm12, %v253_v29  ;;  %vm484_vm12 = vcmask 424960  }
  0xaf   : > { %266 = vst.msk [vmem:[#allocation2 + $0x4] sm:$0x3] %vm265_vm13, %v263_v28  ;;  %vm570_vm13 = vcmask 236544  }
  0xb0   : > { %274 = vst.msk [vmem:[#allocation2 + $0x4] sm:$0x3] %vm273_vm14, %v271_v26  ;;  %vm527_vm14 = vcmask 261120  }
  0xb4   : > { %v279_v31 = vpop.permute.xlu0 %278 }
  0xb5   : > { %v287_v32 = vpop.permute.xlu1 %286  ;;  %282 = vst.msk [vmem:[#allocation2 + $0x4] sm:$0x3] %vm281_vm15, %v279_v31  ;;  %vm548_vm15 = vcmask 244736  }
  0xb6   : > { %290 = vst.msk [vmem:[#allocation2 + $0x4] sm:$0x3] %vm289_vm0, %v287_v32  ;;  %vm634_vm0 = vcmask 211968  }
  0xb7   : > { %298 = vst.msk [vmem:[#allocation2 + $0x4] sm:$0x3] %vm297_vm1, %v295_v30  ;;  %vm591_vm1 = vcmask 228352  }
  0xbc   : > { %v303_v33 = vpop.permute.xlu0 %302 }
  0xbd   : > { %v311_v34 = vpop.permute.xlu1 %310  ;;  %306 = vst.msk [vmem:[#allocation2 + $0x6] sm:$0x3] %vm305_vm3, %v303_v33  ;;  %vm613_vm3 = vcmask 220160  }
  0xbe   : > { %v331_v36 = vld [vmem:[#allocation2] sm:$0x3f]  ;;  %314 = vst.msk [vmem:[#allocation2 + $0x6] sm:$0x3] %vm313_vm4, %v311_v34  ;;  %vm699_vm4 = vcmask 31744  }
  0xbf   : > { %333 = vst [vmem:[#allocation1] ss:$2 sm:$0xff] %v331_v36 }
  0xc0   : > { %322 = vst.msk [vmem:[#allocation2 + $0x6] sm:$0x3] %vm321_vm5, %v319_v35  ;;  %vm656_vm5 = vcmask 195584  }
  0xc4   : > { %v327_v37 = vpop.permute.xlu0 %326 }
  0xc5   : > { %330 = vst.msk [vmem:[#allocation2 + $0x6] sm:$0x3] %vm329_vm6, %v327_v37  ;;  %vm677_vm6 = vcmask 39936  }
  0xc6   : > { %v334_v38 = vld.sshfl [vmem:[#allocation1] sm:$0xff pattern:$0x75643120]  ;;  %v335_v39 = vld.sshfl [vmem:[#allocation1 + $0x8] sm:$0xff pattern:$0x75643120] }
  0xc7   : > { %338 = vst [vmem:[#allocation3] sm:$0x33] %v334_v38 }
  0xc8   : > { %339 = vst [vmem:[#allocation3 + $0x8] sm:$0x3] %v335_v39 }
  0xcc   : > { %v1667_v40 = vld [vmem:[#allocation2] sm:$0xff] }
  0xcd   : > { %343 = vst [vmem:[#allocation1 + $0x1] ss:$2 sm:$0xff] %v1667_v40  ;;  %v1727_v14 = vld [vmem:[#allocation2 + $0x2] sm:$0xff] }
  0xd4   : > { %v1670_v41 = vld.sshfl [vmem:[#allocation1] sm:$0xff pattern:$0x75643120]  ;;  %v1672_v42 = vld.sshfl [vmem:[#allocation1 + $0x8] sm:$0xff pattern:$0x75643120] }
  0xd5   : > { %364 = vst [vmem:[#allocation1] ss:$2 sm:$0xff] %v1667_v40 }
  0xdc   : > { %v1675_v43 = vld.sshfl [vmem:[#allocation1] sm:$0xff pattern:$0x75643120]  ;;  %v1677_v44 = vld.sshfl [vmem:[#allocation1 + $0x8] sm:$0xff pattern:$0x75643120] }
  0xdd   : > { %386 = vst [vmem:[#allocation1 + $0x1] ss:$2 sm:$0xff] %v1667_v40 }
  0xe4   : > { %v1680_v45 = vld.sshfl [vmem:[#allocation1] sm:$0xff pattern:$0x75643120]  ;;  %v1682_v46 = vld.sshfl [vmem:[#allocation1 + $0x8] sm:$0xff pattern:$0x75643120] }
  0xe5   : > { %407 = vst [vmem:[#allocation1] ss:$2 sm:$0xff] %v1667_v40 }
  0xec   : > { %v1685_v47 = vld.sshfl [vmem:[#allocation1] sm:$0xff pattern:$0x75643120]  ;;  %v410_v48 = vld.sshfl [vmem:[#allocation1 + $0x8] sm:$0xff pattern:$0x75643120] }
  0xed   : > { %429 = vst [vmem:[#allocation1 + $0x1] ss:$2 sm:$0xff] %v1667_v40  ;;  %414 = vrot.lane.b32.xlu1 %v410_v48, %s1508_s4 }
  0xf4   : > { %v1689_v49 = vld.sshfl [vmem:[#allocation1] sm:$0xff pattern:$0x75643120]  ;;  %v432_v50 = vld.sshfl [vmem:[#allocation1 + $0x8] sm:$0xff pattern:$0x75643120] }
  0xf5   : > { %450 = vst [vmem:[#allocation1] ss:$2 sm:$0xff] %v1667_v40  ;;  %436 = vrot.lane.b32.xlu2 %v432_v50, %s1510_s6 }
  0xfc   : > { %v1693_v51 = vld.sshfl [vmem:[#allocation1] sm:$0xff pattern:$0x75643120]  ;;  %v453_v52 = vld.sshfl [vmem:[#allocation1 + $0x8] sm:$0xff pattern:$0x75643120] }
  0xfd   : > { %457 = vrot.lane.b32.xlu0 %v453_v52, %s1511_s7  ;;  %472 = vst [vmem:[#allocation1 + $0x1] ss:$2 sm:$0xff] %v1667_v40 }
 0x104   : > { %v475_v53 = vld.sshfl [vmem:[#allocation1 + $0x8] sm:$0xff pattern:$0x75643120]  ;;  %v1697_v54 = vld.sshfl [vmem:[#allocation1] sm:$0xff pattern:$0x75643120] }
 0x105   : > { %479 = vrot.lane.b32.xlu1 %v475_v53, %s1507_s30  ;;  %493 = vst [vmem:[#allocation1] ss:$2 sm:$0xff] %v1667_v40 }
 0x10c   : > { %v496_v55 = vld.sshfl [vmem:[#allocation1 + $0x8] sm:$0xff pattern:$0x75643120]  ;;  %v494_v56 = vld.sshfl [vmem:[#allocation1] sm:$0xff pattern:$0x75643120] }
 0x10d   : > { %500 = vrot.lane.b32.xlu2 %v496_v55, %s1512_s8  ;;  %515 = vst [vmem:[#allocation1 + $0x1] ss:$2 sm:$0xff] %v1667_v40 }
 0x114   : > { %v518_v57 = vld.sshfl [vmem:[#allocation1 + $0x8] sm:$0xff pattern:$0x75643120]  ;;  %v516_v58 = vld.sshfl [vmem:[#allocation1] sm:$0xff pattern:$0x75643120] }
 0x115   : > { %498 = vrot.lane.b32.xlu2 %v494_v56, %s1512_s8  ;;  %522 = vrot.lane.b32.xlu0 %v518_v57, %s1513_s23  ;;  %536 = vst [vmem:[#allocation1] ss:$2 sm:$0xff] %v1667_v40  ;;  %s1521_s8 = smov 110  }
 0x11c   : > { %v1703_v59 = vld.sshfl [vmem:[#allocation1] sm:$0xff pattern:$0x75643120]  ;;  %v539_v60 = vld.sshfl [vmem:[#allocation1 + $0x8] sm:$0xff pattern:$0x75643120] }
 0x11d   : > { %520 = vrot.lane.b32.xlu0 %v516_v58, %s1513_s23  ;;  %543 = vrot.lane.b32.xlu1 %v539_v60, %s1514_s9  ;;  %558 = vst [vmem:[#allocation1 + $0x1] ss:$2 sm:$0xff] %v1667_v40  ;;  %s1524_s23 = smov 56  }
 0x124   : > { %v1707_v61 = vld.sshfl [vmem:[#allocation1] sm:$0xff pattern:$0x75643120]  ;;  %v561_v62 = vld.sshfl [vmem:[#allocation1 + $0x8] sm:$0xff pattern:$0x75643120] }
 0x125   : > { %565 = vrot.lane.b32.xlu2 %v561_v62, %s1515_s10  ;;  %579 = vst [vmem:[#allocation1] ss:$2 sm:$0xff] %v1667_v40 }
 0x12c   : > { %v582_v63 = vld.sshfl [vmem:[#allocation1 + $0x8] sm:$0xff pattern:$0x75643120]  ;;  %v580_v0 = vld.sshfl [vmem:[#allocation1] sm:$0xff pattern:$0x75643120] }
 0x12d   : > { %586 = vrot.lane.b32.xlu0 %v582_v63, %s1506_s28  ;;  %601 = vst [vmem:[#allocation1 + $0x1] ss:$2 sm:$0xff] %v1667_v40 }
 0x134   : > { %v604_v1 = vld.sshfl [vmem:[#allocation1 + $0x8] sm:$0xff pattern:$0x75643120]  ;;  %v602_v2 = vld.sshfl [vmem:[#allocation1] sm:$0xff pattern:$0x75643120] }
 0x135   : > { %584 = vrot.lane.b32.xlu0 %v580_v0, %s1506_s28  ;;  %608 = vrot.lane.b32.xlu1 %v604_v1, %s1516_s11  ;;  %622 = vst [vmem:[#allocation1] ss:$2 sm:$0xff] %v1667_v40  ;;  %s1520_s28 = smov 3  }
 0x13c   : > { %v625_v3 = vld.sshfl [vmem:[#allocation1 + $0x8] sm:$0xff pattern:$0x75643120]  ;;  %v623_v4 = vld.sshfl [vmem:[#allocation1] sm:$0xff pattern:$0x75643120] }
 0x13d   : > { %606 = vrot.lane.b32.xlu1 %v602_v2, %s1516_s11  ;;  %629 = vrot.lane.b32.xlu2 %v625_v3, %s1517_s17  ;;  %644 = vst [vmem:[#allocation1 + $0x1] ss:$2 sm:$0xff] %v1667_v40  ;;  %s1526_s11 = smov 120  }
 0x144   : > { %v647_v5 = vld.sshfl [vmem:[#allocation1 + $0x8] sm:$0xff pattern:$0x75643120]  ;;  %v645_v6 = vld.sshfl [vmem:[#allocation1] sm:$0xff pattern:$0x75643120] }
 0x145   : > { %627 = vrot.lane.b32.xlu2 %v623_v4, %s1517_s17  ;;  %651 = vrot.lane.b32.xlu0 %v647_v5, %s1518_s19  ;;  %665 = vst [vmem:[#allocation1] ss:$2 sm:$0xff] %v1667_v40 }
 0x14c   : > { %v668_v7 = vld.sshfl [vmem:[#allocation1 + $0x8] sm:$0xff pattern:$0x75643120]  ;;  %v666_v8 = vld.sshfl [vmem:[#allocation1] sm:$0xff pattern:$0x75643120] }
 0x14d   : > { %649 = vrot.lane.b32.xlu0 %v645_v6, %s1518_s19  ;;  %672 = vrot.lane.b32.xlu1 %v668_v7, %s1519_s22  ;;  %687 = vst [vmem:[#allocation1 + $0x1] ss:$2 sm:$0xff] %v1667_v40 }
 0x14f   : > { %v1718_v9 = vpop.permute.xlu2 %436 }
 0x150   : > { %v439_v10 = vrot.slane %v1718_v9, 4 }
 0x152   : > { %v443_v11 = vsel %vm441_vm7, %v1718_v9, %v439_v10 }
 0x153   : > { %447 = vst [vmem:[#allocation3 + $0x20] sm:$0xc] %v443_v11 }
 0x154   : > { %v690_v12 = vld.sshfl [vmem:[#allocation1 + $0x8] sm:$0xff pattern:$0x75643120]  ;;  %v688_v13 = vld.sshfl [vmem:[#allocation1] sm:$0xff pattern:$0x75643120] }
 0x155   : > { %670 = vrot.lane.b32.xlu1 %v666_v8, %s1519_s22  ;;  %694 = vrot.lane.b32.xlu2 %v690_v12, %s1505_s26  ;;  %708 = vst [vmem:[#allocation1] ss:$2 sm:$0xff] %v1667_v40 }
 0x15c   : > { %v711_v15 = vld.sshfl [vmem:[#allocation1 + $0x8] sm:$0xff pattern:$0x75643120]  ;;  %v709_v16 = vld.sshfl [vmem:[#allocation1] sm:$0xff pattern:$0x75643120] }
 0x15d   : > { %692 = vrot.lane.b32.xlu2 %v688_v13, %s1505_s26  ;;  %715 = vrot.lane.b32.xlu0 %v711_v15, %s1520_s28  ;;  %730 = vst [vmem:[#allocation1 + $0x1] ss:$2 sm:$0xff] %v1727_v14  ;;  %s1522_s26 = smov 106  }
 0x15f   : > { %v1731_v17 = vpop.permute.xlu1 %414 }
 0x160   : > { %v417_v18 = vrot.slane %v1731_v17, 4 }
 0x162   : > { %v421_v19 = vsel %vm419_vm8, %v1731_v17, %v417_v18 }
 0x163   : > { %425 = vst [vmem:[#allocation3 + $0x20] sm:$0x3] %v421_v19 }
 0x164   : > { %v733_v20 = vld.sshfl [vmem:[#allocation1 + $0x8] sm:$0xff pattern:$0x75643120]  ;;  %v731_v21 = vld.sshfl [vmem:[#allocation1] sm:$0xff pattern:$0x75643120] }
 0x165   : > { %713 = vrot.lane.b32.xlu0 %v709_v16, %s1520_s28  ;;  %737 = vrot.lane.b32.xlu1 %v733_v20, %s1521_s8  ;;  %751 = vst [vmem:[#allocation1] ss:$2 sm:$0xff] %v1727_v14 }
 0x167   : > { %v501_v22 = vpop.permute.xlu2 %500 }
 0x168   : > { %v503_v23 = vrot.slane %v501_v22, 4 }
 0x16a   : > { %v507_v24 = vsel %vm505_vm9, %v501_v22, %v503_v23 }
 0x16b   : > { %511 = vst [vmem:[#allocation3 + $0x38] sm:$0x3] %v507_v24 }
 0x16c   : > { %v754_v25 = vld.sshfl [vmem:[#allocation1 + $0x8] sm:$0xff pattern:$0x75643120]  ;;  %v752_v26 = vld.sshfl [vmem:[#allocation1] sm:$0xff pattern:$0x75643120] }
 0x16d   : > { %735 = vrot.lane.b32.xlu1 %v731_v21, %s1521_s8  ;;  %758 = vrot.lane.b32.xlu2 %v754_v25, %s1504_s27  ;;  %773 = vst [vmem:[#allocation1 + $0x1] ss:$2 sm:$0xff] %v1727_v14 }
 0x16f   : > { %v1742_v27 = vpop.permute.xlu0 %457  ;;  %v499_v28 = vpop.permute.xlu2 %498 }
 0x170   : > { %v460_v29 = vrot.slane %v1742_v27, 4  ;;  %v502_v30 = vrot.slane %v499_v28, 4 }
 0x172   : > { %v464_v31 = vsel %vm462_vm10, %v1742_v27, %v460_v29  ;;  %v504_v32 = vsel %vm354_vm11, %v502_v30, %v503_v23 }
 0x173   : > { %468 = vst [vmem:[#allocation3 + $0x2c] sm:$0x3] %v464_v31  ;;  %v506_v33 = vsel %vm505_vm9, %v499_v28, %v504_v32  ;;  %vm763_vm9 = vcmask 883712  }
 0x174   : > { %510 = vst [vmem:[#allocation3 + $0x30] sm:$0x33] %v506_v33  ;;  %v776_v34 = vld.sshfl [vmem:[#allocation1 + $0x8] sm:$0xff pattern:$0x75643120] }
 0x175   : > { %756 = vrot.lane.b32.xlu2 %v752_v26, %s1504_s27  ;;  %780 = vrot.lane.b32.xlu0 %v776_v34, %s1522_s26  ;;  %v774_v35 = vld.sshfl [vmem:[#allocation1] sm:$0xff pattern:$0x75643120]  ;;  %s1523_s27 = smov 64  }
 0x176   : > { %794 = vst [vmem:[#allocation1] ss:$2 sm:$0xff] %v1727_v14 }
 0x177   : > { %v1753_v36 = vpop.permute.xlu1 %479 }
 0x178   : > { %v482_v37 = vrot.slane %v1753_v36, 4 }
 0x17a   : > { %v486_v38 = vsel %vm484_vm12, %v1753_v36, %v482_v37 }
 0x17b   : > { %490 = vst [vmem:[#allocation3 + $0x2c] sm:$0xc] %v486_v38 }
 0x17d   : > { %778 = vrot.lane.b32.xlu0 %v774_v35, %s1522_s26  ;;  %v797_v39 = vld.sshfl [vmem:[#allocation1 + $0x8] sm:$0xff pattern:$0x75643120]  ;;  %v795_v40 = vld.sshfl [vmem:[#allocation1] sm:$0xff pattern:$0x75643120] }
 0x17e   : > { %801 = vrot.lane.b32.xlu1 %v797_v39, %s1523_s27  ;;  %816 = vst [vmem:[#allocation1 + $0x1] ss:$2 sm:$0xff] %v1727_v14 }
 0x17f   : > { %v1761_v48 = vpop.permute.xlu2 %565 }
 0x180   : > { %v568_v50 = vrot.slane %v1761_v48, 4 }
 0x182   : > { %v572_v52 = vsel %vm570_vm13, %v1761_v48, %v568_v50 }
 0x183   : > { %576 = vst [vmem:[#allocation3 + $0x44] sm:$0xc] %v572_v52 }
 0x185   : > { %350 = vrot.lane.b32.xlu0 %v1672_v42, %s1493_s5  ;;  %v819_v53 = vld.sshfl [vmem:[#allocation1 + $0x8] sm:$0xff pattern:$0x75643120]  ;;  %v817_v55 = vld.sshfl [vmem:[#allocation1] sm:$0xff pattern:$0x75643120] }
 0x186   : > { %799 = vrot.lane.b32.xlu1 %v795_v40, %s1523_s27  ;;  %823 = vrot.lane.b32.xlu2 %v819_v53, %s1502_s20  ;;  %837 = vst [vmem:[#allocation1] ss:$2 sm:$0xff] %v1727_v14 }
 0x187   : > { %v523_v56 = vpop.permute.xlu0 %522 }
 0x188   : > { %v525_v57 = vrot.slane %v523_v56, 4 }
 0x18a   : > { %v529_v58 = vsel %vm527_vm14, %v523_v56, %v525_v57 }
 0x18b   : > { %533 = vst [vmem:[#allocation3 + $0x38] sm:$0xc] %v529_v58 }
 0x18d   : > { %v840_v60 = vld.sshfl [vmem:[#allocation1 + $0x8] sm:$0xff pattern:$0x75643120]  ;;  %v838_v62 = vld.sshfl [vmem:[#allocation1] sm:$0xff pattern:$0x75643120] }
 0x18e   : > { %821 = vrot.lane.b32.xlu2 %v817_v55, %s1502_s20  ;;  %844 = vrot.lane.b32.xlu1 %v840_v60, %s1524_s23  ;;  %s1525_s20 = smov 78  }
 0x18f   : > { %842 = vrot.lane.b32.xlu0 %v838_v62, %s1524_s23  ;;  %v521_v42 = vpop.permute.xlu0 %520  ;;  %v1774_v63 = vpop.permute.xlu1 %543 }
 0x190   : > { %v524_v0 = vrot.slane %v521_v42, 4  ;;  %v546_v1 = vrot.slane %v1774_v63, 4 }
 0x192   : > { %v526_v2 = vsel %vm354_vm11, %v524_v0, %v525_v57  ;;  %v550_v3 = vsel %vm548_vm15, %v1774_v63, %v546_v1 }
 0x193   : > { %v528_v4 = vsel %vm527_vm14, %v521_v42, %v526_v2  ;;  %554 = vst [vmem:[#allocation3 + $0x44] sm:$0x3] %v550_v3  ;;  %vm720_vm14 = vcmask 23552  }
 0x194   : > { %532 = vst [vmem:[#allocation3 + $0x30] sm:$0xcc] %v528_v4 }
 0x196   : > { %563 = vrot.lane.b32.xlu2 %v1707_v61, %s1515_s10  ;;  %541 = vrot.lane.b32.xlu1 %v1703_v59, %s1514_s9  ;;  %s1307_s9 = smul.u32 24, %s1633_s29 }
 0x197   : > { %412 = vrot.lane.b32.xlu0 %v1685_v47, %s1508_s4  ;;  %v630_v5 = vpop.permute.xlu2 %629 }
 0x198   : > { %v632_v6 = vrot.slane %v630_v5, 4  ;;  %s190_s22 = scalar_lea.vmem [#allocation7], %s1307_s9 }
 0x199   : > { %s1087_s28 = sshll.u32 %s190_s22, 4  ;;  %s1088_s28 = int_to_ptr.vmem [resolvable:$true] %s1087_s28 }
 0x19a   : > { %v636_v7 = vsel %vm634_vm0, %v630_v5, %v632_v6 }
 0x19b   : > { %640 = vst [vmem:[#allocation3 + $0x5c] sm:$0x3] %v636_v7  ;;  %v1289_v9 = vld [vmem:[#allocation3 + $0x34] sm:$0xf] }
 0x19e   : > { %393 = vrot.lane.b32.xlu2 %v1682_v46, %s1525_s20  ;;  %371 = vrot.lane.b32.xlu1 %v1677_v44, %s1526_s11 }
 0x19f   : > { %477 = vrot.lane.b32.xlu0 %v1697_v54, %s1507_s30  ;;  %v587_v59 = vpop.permute.xlu0 %586  ;;  %v628_v61 = vpop.permute.xlu2 %627 }
 0x1a0   : > { %v589_v8 = vrot.slane %v587_v59, 4  ;;  %v631_v47 = vrot.slane %v628_v61, 4 }
 0x1a2   : > { %v593_v11 = vsel %vm591_vm1, %v587_v59, %v589_v8  ;;  %v633_v12 = vsel %vm354_vm11, %v631_v47, %v632_v6 }
 0x1a3   : > { %597 = vst [vmem:[#allocation3 + $0x50] sm:$0x3] %v593_v11  ;;  %v635_v13 = vsel %vm634_vm0, %v628_v61, %v633_v12  ;;  %vm742_vm0 = vcmask 900096  }
 0x1a4   : > { %639 = vst [vmem:[#allocation3 + $0x54] sm:$0x33] %v635_v13 }
 0x1a6   : > { %455 = vrot.lane.b32.xlu2 %v1693_v51, %s1511_s7  ;;  %434 = vrot.lane.b32.xlu1 %v1689_v49, %s1510_s6  ;;  %s1308_s7 = smul.u32 24, %s1568_s16  ;;  %s1074_s16 = scalar_lea.sflag [#allocation6], %s1633_s29 }
 0x1a7   : > { %391 = vrot.lane.b32.xlu0 %v1680_v45, %s1525_s20  ;;  %v585_v44 = vpop.permute.xlu0 %584  ;;  %v609_v46 = vpop.permute.xlu1 %608 }
 0x1a8   : > { %v588_v54 = vrot.slane %v585_v44, 4  ;;  %v611_v14 = vrot.slane %v609_v46, 4  ;;  %s1085_s19 = scalar_lea.hbm %s1928_s3, %s1308_s7 }
 0x1a9   : > { %s1089_s8 = sshll.u32 %s1085_s19, 4  ;;  %s1090_s8 = int_to_ptr.hbm [resolvable:$true] %s1089_s8 }
 0x1aa   : > { %v590_v15 = vsel %vm354_vm11, %v588_v54, %v589_v8  ;;  %v615_v16 = vsel %vm613_vm3, %v609_v46, %v611_v14  ;;  %s1437_s26 = sshra.s32 %s1090_s8, 4  ;;  %s1438_s26 = int_to_ptr.hbm [resolvable:$true] %s1437_s26 }
 0x1ab   : > { %v592_v19 = vsel %vm591_vm1, %v585_v44, %v590_v15  ;;  %619 = vst [vmem:[#allocation3 + $0x50] sm:$0xc] %v615_v16  ;;  %vm828_vm1 = vcmask 490496   ;;  %s1439_s27 = scalar_lea.hbm %s1438_s26, 24  ;;  %p1444_p0 = scmp.lt.s32.totalorder %s1438_s26, %s1928_s3 }
 0x1ac   : > { %596 = vst [vmem:[#allocation3 + $0x48] sm:$0x33] %v592_v19  ;;  %p1440_p6 = scmp.ne.s32.totalorder %s1438_s26, %s1439_s27 }
 0x1ae   : > { %369 = vrot.lane.b32.xlu2 %v1675_v43, %s1526_s11  ;;  %348 = vrot.lane.b32.xlu1 %v1670_v41, %s1493_s5  ;;  %p1441_p9 = pnand %p1440_p6, %p1597_p11  ;;  %s1443_s11 = scalar_lea.hbm %s1928_s3, 48 }
 0x1af   : > { %v607_v49 = vpop.permute.xlu1 %606  ;;  %v695_v45 = vpop.permute.xlu2 %694  ;;  %p1445_p1 = scmp.lt.s32.totalorder %s1443_s11, %s1439_s27 }
 0x1b0   : > { %v610_v51 = vrot.slane %v607_v49, 4  ;;  %v697_v20 = vrot.slane %v695_v45, 4  ;;  %p1442_p13 = pneg %p1441_p9 }
 0x1b1   : > { %p1446_p3 = por %p1445_p1, %p1444_p0 }
 0x1b2   : > { %v612_v21 = vsel %vm354_vm11, %v610_v51, %v611_v14  ;;  %v701_v22 = vsel %vm699_vm4, %v695_v45, %v697_v20  ;;  %v1306_v45 = vld [vmem:[#allocation3 + $0xb8] sm:$0xf0] }
 0x1b3   : > { %v614_v23 = vsel %vm613_vm3, %v607_v49, %v612_v21  ;;  %705 = vst [vmem:[#allocation3 + $0x68] sm:$0xc] %v701_v22  ;;  %vm785_vm3 = vcmask 867328   ;;  %v1277_v49 = vld [vmem:[#allocation3 + $0xb0] sm:$0xf]  ;;  %p1447_p4 = pnand %p1446_p3, %p1442_p13 }
 0x1b4   : > { %618 = vst [vmem:[#allocation3 + $0x48] sm:$0xcc] %v614_v23  ;;  %v1269_v21 = vld [vmem:[#allocation3 + $0xa8] sm:$0xf]  ;;  %v1305_v22 = vld [vmem:[#allocation3 + $0xb0] sm:$0xf0] }
 0x1b7   : > { %v652_v24 = vpop.permute.xlu0 %651  ;;  %v693_v25 = vpop.permute.xlu2 %692 }
 0x1b8   : > { %v654_v43 = vrot.slane %v652_v24, 4  ;;  %v696_v26 = vrot.slane %v693_v25, 4 }
 0x1ba   : > { %v658_v41 = vsel %vm656_vm5, %v652_v24, %v654_v43  ;;  %v698_v28 = vsel %vm354_vm11, %v696_v26, %v697_v20  ;;  %v1278_v20 = vor.u32 %v1306_v45, %v1277_v49  ;;  %v1270_v24 = vor.u32 %v1305_v22, %v1269_v21 }
 0x1bb   : > { %662 = vst [vmem:[#allocation3 + $0x5c] sm:$0xc] %v658_v41  ;;  %v700_v30 = vsel %vm699_vm4, %v693_v25, %v698_v28  ;;  %v1304_v25 = vld [vmem:[#allocation3 + $0xac] sm:$0xf]  ;;  %vm806_vm4 = vcmask 523264  }
 0x1bc   : > { %704 = vst [vmem:[#allocation3 + $0x60] sm:$0xcc] %v700_v30  ;;  %1057 = vmatpush.bf16.msra.mxu2 %v1278_v20  ;;  %1031 = vmatpush.bf16.msra.mxu0 %v1270_v24 }
 0x1bf   : > { %v650_v31 = vpop.permute.xlu0 %649  ;;  %v673_v32 = vpop.permute.xlu1 %672 }
 0x1c0   : > { %v653_v33 = vrot.slane %v650_v31, 4  ;;  %v675_v34 = vrot.slane %v673_v32, 4 }
 0x1c2   : > { %v655_v35 = vsel %vm354_vm11, %v653_v33, %v654_v43  ;;  %v679_v38 = vsel %vm677_vm6, %v673_v32, %v675_v34  ;;  %v1271_v43 = vld [vmem:[#allocation3 + $0xb4] sm:$0xf0] }
 0x1c3   : > { %v657_v39 = vsel %vm656_vm5, %v650_v31, %v655_v35  ;;  %683 = vst [vmem:[#allocation3 + $0x68] sm:$0x3] %v679_v38  ;;  %v1274_v41 = vor.u32 %v1304_v25, %v1271_v43  ;;  %vm398_vm5 = vcmask 637952  }
 0x1c4   : > { %661 = vst [vmem:[#allocation3 + $0x54] sm:$0xcc] %v657_v39 }
 0x1c5   : > { %1044 = vmatpush.bf16.msra.mxu1 %v1274_v41 }
 0x1c7   : > { %v671_v40 = vpop.permute.xlu1 %670  ;;  %v759_v52 = vpop.permute.xlu2 %758 }
 0x1c8   : > { %v674_v53 = vrot.slane %v671_v40, 4  ;;  %v761_v55 = vrot.slane %v759_v52, 4 }
 0x1ca   : > { %v676_v56 = vsel %vm354_vm11, %v674_v53, %v675_v34  ;;  %v765_v57 = vsel %vm763_vm9, %v759_v52, %v761_v55 }
 0x1cb   : > { %v678_v58 = vsel %vm677_vm6, %v671_v40, %v676_v56  ;;  %769 = vst [vmem:[#allocation3 + $0x80] sm:$0x3] %v765_v57 }
 0x1cc   : > { %682 = vst [vmem:[#allocation3 + $0x60] sm:$0x33] %v678_v58 }
 0x1cf   : > { %v716_v60 = vpop.permute.xlu0 %715  ;;  %v757_v62 = vpop.permute.xlu2 %756 }
 0x1d0   : > { %v718_v42 = vrot.slane %v716_v60, 4  ;;  %v760_v0 = vrot.slane %v757_v62, 4 }
 0x1d2   : > { %v722_v2 = vsel %vm720_vm14, %v716_v60, %v718_v42  ;;  %v762_v3 = vsel %vm354_vm11, %v760_v0, %v761_v55 }
 0x1d3   : > { %726 = vst [vmem:[#allocation3 + $0x74] sm:$0x3] %v722_v2  ;;  %v764_v4 = vsel %vm763_vm9, %v757_v62, %v762_v3 }
 0x1d4   : > { %768 = vst [vmem:[#allocation3 + $0x78] sm:$0x33] %v764_v4 }
 0x1d7   : > { %v714_v5 = vpop.permute.xlu0 %713  ;;  %v738_v6 = vpop.permute.xlu1 %737 }
 0x1d8   : > { %v717_v7 = vrot.slane %v714_v5, 4  ;;  %v740_v59 = vrot.slane %v738_v6, 4 }
 0x1da   : > { %v719_v61 = vsel %vm354_vm11, %v717_v7, %v718_v42  ;;  %v744_v8 = vsel %vm742_vm0, %v738_v6, %v740_v59 }
 0x1db   : > { %v721_v47 = vsel %vm720_vm14, %v714_v5, %v719_v61  ;;  %748 = vst [vmem:[#allocation3 + $0x74] sm:$0xc] %v744_v8 }
 0x1dc   : > { %725 = vst [vmem:[#allocation3 + $0x6c] sm:$0x33] %v721_v47 }
 0x1df   : > { %v736_v11 = vpop.permute.xlu1 %735 }
 0x1e0   : > { %v739_v12 = vrot.slane %v736_v11, 4  ;;  %v824_v13 = vpop.permute.xlu2 %823 }
 0x1e1   : > { %v826_v44 = vrot.slane %v824_v13, 4 }
 0x1e2   : > { %v741_v46 = vsel %vm354_vm11, %v739_v12, %v740_v59  ;;  %v1297_v43 = vld [vmem:[#allocation3 + $0x70] sm:$0xf0] }
 0x1e3   : > { %v743_v54 = vsel %vm742_vm0, %v736_v11, %v741_v46  ;;  %v830_v14 = vsel %vm828_vm1, %v824_v13, %v826_v44  ;;  %v1303_v46 = vld [vmem:[#allocation3 + $0xa0] sm:$0xf0] }
 0x1e4   : > { %747 = vst [vmem:[#allocation3 + $0x6c] sm:$0xcc] %v743_v54 }
 0x1e5   : > { %834 = vst [vmem:[#allocation3 + $0x8c] sm:$0xc] %v830_v14 }
 0x1e7   : > { %v781_v15 = vpop.permute.xlu0 %780 }
 0x1e8   : > { %v783_v16 = vrot.slane %v781_v15, 4  ;;  %v822_v19 = vpop.permute.xlu2 %821 }
 0x1e9   : > { %v825_v51 = vrot.slane %v822_v19, 4 }
 0x1ea   : > { %v787_v23 = vsel %vm785_vm3, %v781_v15, %v783_v16  ;;  %v1259_v15 = vld [vmem:[#allocation3 + $0x9c] sm:$0xf0] }
 0x1eb   : > { %791 = vst [vmem:[#allocation3 + $0x80] sm:$0xc] %v787_v23  ;;  %v827_v26 = vsel %vm354_vm11, %v825_v51, %v826_v44 }
 0x1ec   : > { %v829_v28 = vsel %vm828_vm1, %v822_v19, %v827_v26 }
 0x1ed   : > { %833 = vst [vmem:[#allocation3 + $0x84] sm:$0xcc] %v829_v28 }
 0x1ef   : > { %v779_v30 = vpop.permute.xlu0 %778 }
 0x1f0   : > { %v782_v31 = vrot.slane %v779_v30, 4  ;;  %v802_v32 = vpop.permute.xlu1 %801  ;;  %v564_v33 = vpop.permute.xlu2 %563 }
 0x1f1   : > { %v804_v34 = vrot.slane %v802_v32, 4  ;;  %v567_v35 = vrot.slane %v564_v33, 4 }
 0x1f2   : > { %v784_v38 = vsel %vm354_vm11, %v782_v31, %v783_v16  ;;  %v1253_v23 = vld [vmem:[#allocation3 + $0x80] sm:$0xf] }
 0x1f3   : > { %v786_v39 = vsel %vm785_vm3, %v779_v30, %v784_v38  ;;  %v808_v40 = vsel %vm806_vm4, %v802_v32, %v804_v34  ;;  %v569_v52 = vsel %vm354_vm11, %v567_v35, %v568_v50  ;;  %v897_v35 = vld [vmem:[%s1927_s2] sm:$0xff] }
 0x1f4   : > { %790 = vst [vmem:[#allocation3 + $0x78] sm:$0xcc] %v786_v39  ;;  %v571_v53 = vsel %vm570_vm13, %v564_v33, %v569_v52  ;;  %vm849_vm13 = vcmask 457728   ;;  %v1296_v52 = vld [vmem:[#allocation3 + $0x68] sm:$0xf0]  ;;  %900 = vperm.xlu1 %1391, %v897_v35  }
 0x1f5   : > { %812 = vst [vmem:[#allocation3 + $0x8c] sm:$0x3] %v808_v40  ;;  %v1241_v40 = vld [vmem:[#allocation3 + $0x68] sm:$0xf] }
 0x1f6   : > { %575 = vst [vmem:[#allocation3 + $0x3c] sm:$0xcc] %v571_v53  ;;  %v1235_v53 = vld [vmem:[#allocation3 + $0x6c] sm:$0xf0] }
 0x1f7   : > { %v1837_v55 = vpop.permute.xlu0 %350 }
 0x1f8   : > { %v353_v56 = vrot.slane %v1837_v55, 4  ;;  %v800_v57 = vpop.permute.xlu1 %799  ;;  %v1840_v58 = vpop.permute.xlu2 %393 }
 0x1f9   : > { %v803_v60 = vrot.slane %v800_v57, 4  ;;  %v396_v62 = vrot.slane %v1840_v58, 4 }
 0x1fa   : > { %v357_v48 = vsel %vm207_vm2, %v1837_v55, %v353_v56  ;;  %v864_v55 = vld [vmem:[%s1926_s1] sm:$0xf] }
 0x1fb   : > { %361 = vst [vmem:[#allocation3 + $0x8] sm:$0xc] %v357_v48  ;;  %v805_v50 = vsel %vm354_vm11, %v803_v60, %v804_v34  ;;  %v400_v42 = vsel %vm398_vm5, %v1840_v58, %v396_v62  ;;  %v1245_v30 = vld [vmem:[#allocation3 + $0x78] sm:$0xf]  ;;  %v1298_v31 = vld [vmem:[#allocation3 + $0x7c] sm:$0xf]  ;;  %v1242_v48 = vor.u32 %v1297_v43, %v1241_v40 }
 0x1fc   : > { %v807_v0 = vsel %vm806_vm4, %v800_v57, %v805_v50  ;;  %404 = vst [vmem:[#allocation3 + $0x14] sm:$0xc] %v400_v42  ;;  %v1300_v45 = vld [vmem:[#allocation3 + $0x88] sm:$0xf0]  ;;  %v1294_v50 = vld [vmem:[#allocation3 + $0x58] sm:$0xf0] }
 0x1fd   : > { %811 = vst [vmem:[#allocation3 + $0x84] sm:$0x33] %v807_v0  ;;  %v1233_v0 = vld [vmem:[#allocation3 + $0x60] sm:$0xf] }
 0x200   : > { %v456_v2 = vpop.permute.xlu2 %455  ;;  %v845_v3 = vpop.permute.xlu1 %844 }
 0x201   : > { %v459_v4 = vrot.slane %v456_v2, 4  ;;  %v847_v5 = vrot.slane %v845_v3, 4  ;;  %v843_v6 = vpop.permute.xlu0 %842 }
 0x202   : > { %v846_v7 = vrot.slane %v843_v6, 4 }
 0x203   : > { %v461_v59 = vsel %vm354_vm11, %v459_v4, %v460_v29  ;;  %v851_v61 = vsel %vm849_vm13, %v845_v3, %v847_v5  ;;  %v1302_v29 = vld [vmem:[#allocation3 + $0x98] sm:$0xf0]  ;;  %v1234_v3 = vor.u32 %v1296_v52, %v1233_v0 }
 0x204   : > { %v463_v8 = vsel %vm462_vm10, %v456_v2, %v461_v59  ;;  %855 = vst [vmem:[#allocation3 + $0x98] sm:$0x3] %v851_v61  ;;  %v848_v47 = vsel %vm354_vm11, %v846_v7, %v847_v5  ;;  %v1299_v24 = vld [vmem:[#allocation3 + $0x80] sm:$0xf0]  ;;  %v1247_v25 = vld [vmem:[#allocation3 + $0x84] sm:$0xf0] }
 0x205   : > { %467 = vst [vmem:[#allocation3 + $0x24] sm:$0x33] %v463_v8  ;;  %v850_v11 = vsel %vm849_vm13, %v843_v6, %v848_v47  ;;  %vm376_vm10 = vcmask 982016   ;;  %v1246_v33 = vor.u32 %v1299_v24, %v1245_v30  ;;  %v1250_v34 = vor.u32 %v1298_v31, %v1247_v25  ;;  %v1295_v2 = vld [vmem:[#allocation3 + $0x64] sm:$0xf] }
 0x206   : > { %854 = vst [vmem:[#allocation3 + $0x90] sm:$0x33] %v850_v11  ;;  %v1238_v4 = vor.u32 %v1295_v2, %v1235_v53  ;;  %v1229_v5 = vld [vmem:[#allocation3 + $0x50] sm:$0xf]  ;;  %v1293_v6 = vld [vmem:[#allocation3 + $0x50] sm:$0xf0] }
 0x207   : > { %v1223_v7 = vld [vmem:[#allocation3 + $0x54] sm:$0xf0]  ;;  %v1291_v59 = vld [vmem:[#allocation3 + $0x40] sm:$0xf0]  ;;  %v1221_v47 = vld [vmem:[#allocation3 + $0x48] sm:$0xf] }
 0x208   : > { %v542_v12 = vpop.permute.xlu1 %541  ;;  %v370_v22 = vpop.permute.xlu2 %369  ;;  %v1292_v11 = vld [vmem:[#allocation3 + $0x4c] sm:$0xf] }
 0x209   : > { %v545_v13 = vrot.slane %v542_v12, 4  ;;  %v413_v44 = vpop.permute.xlu0 %412  ;;  %v373_v26 = vrot.slane %v370_v22, 4 }
 0x20a   : > { %v416_v54 = vrot.slane %v413_v44, 4 }
 0x20b   : > { %v547_v27 = vsel %vm354_vm11, %v545_v13, %v546_v1  ;;  %v1265_v14 = vld [vmem:[#allocation3 + $0x98] sm:$0xf]  ;;  %v1222_v13 = vor.u32 %v1293_v6, %v1221_v47 }
 0x20c   : > { %v549_v16 = vsel %vm548_vm15, %v542_v12, %v547_v27  ;;  %v418_v19 = vsel %vm354_vm11, %v416_v54, %v417_v18  ;;  %v1266_v49 = vor.u32 %v1303_v46, %v1265_v14  ;;  %v1254_v18 = vor.u32 %v1300_v45, %v1253_v23  ;;  %v1217_v54 = vld [vmem:[#allocation3 + $0x38] sm:$0xf]  ;;  %v1209_v45 = vld [vmem:[#allocation3 + $0x30] sm:$0xf] }
 0x20d   : > { %553 = vst [vmem:[#allocation3 + $0x3c] sm:$0x33] %v549_v16  ;;  %v420_v51 = vsel %vm419_vm8, %v413_v44, %v418_v19  ;;  %v1257_v20 = vld [vmem:[#allocation3 + $0x90] sm:$0xf]  ;;  %v1301_v21 = vld [vmem:[#allocation3 + $0x94] sm:$0xf]  ;;  %v1226_v44 = vor.u32 %v1292_v11, %v1223_v7  ;;  %v1218_v16 = vor.u32 %v1291_v59, %v1217_v54 }
 0x20e   : > { %424 = vst [vmem:[#allocation3 + $0x18] sm:$0x33] %v420_v51  ;;  %1058 = vmatpush.bf16.msra.mxu2 %v1266_v49  ;;  %v1258_v63 = vor.u32 %v1302_v29, %v1257_v20  ;;  %v1262_v1 = vor.u32 %v1301_v21, %v1259_v15  ;;  %v1288_v19 = vld [vmem:[#allocation3 + $0x28] sm:$0xf0]  ;;  %v1205_v20 = vld [vmem:[#allocation3 + $0x20] sm:$0xf] }
 0x20f   : > { %v1206_v58 = vor.u32 %v1288_v19, %v1205_v20 }
 0x210   : > { %1032 = vmatpush.bf16.msra.mxu0 %v1258_v63  ;;  %1045 = vmatpush.bf16.msra.mxu1 %v1262_v1  ;;  %v372_v17 = vpop.permute.xlu1 %371  ;;  %v1193_v1 = vld [vmem:[#allocation3 + $0x8] sm:$0xf] }
 0x211   : > { %v374_v41 = vrot.slane %v372_v17, 4  ;;  %v478_v28 = vpop.permute.xlu0 %477 }
 0x212   : > { %v481_v32 = vrot.slane %v478_v28, 4  ;;  %1059 = vmatpush.bf16.msra.mxu2 %v1254_v18 }
 0x213   : > { %v375_v38 = vsel %vm354_vm11, %v373_v26, %v374_v41  ;;  %v378_v39 = vsel %vm376_vm10, %v372_v17, %v374_v41 }
 0x214   : > { %v377_v57 = vsel %vm376_vm10, %v370_v22, %v375_v38  ;;  %382 = vst [vmem:[#allocation3 + $0x14] sm:$0x3] %v378_v39  ;;  %v483_v60 = vsel %vm354_vm11, %v481_v32, %v482_v37  ;;  %1033 = vmatpush.bf16.msra.mxu0 %v1246_v33  ;;  %1046 = vmatpush.bf16.msra.mxu1 %v1250_v34  ;;  %v1290_v27 = vld [vmem:[#allocation3 + $0x38] sm:$0xf0]  ;;  %v1211_v14 = vld [vmem:[#allocation3 + $0x3c] sm:$0xf0] }
 0x215   : > { %381 = vst [vmem:[#allocation3 + $0xc] sm:$0x33] %v377_v57  ;;  %v485_v42 = vsel %vm484_vm12, %v478_v28, %v483_v60  ;;  %v1230_v37 = vor.u32 %v1294_v50, %v1229_v5  ;;  %v1214_v51 = vor.u32 %v1289_v9, %v1211_v14 }
 0x216   : > { %489 = vst [vmem:[#allocation3 + $0x24] sm:$0xcc] %v485_v42  ;;  %1060 = vmatpush.bf16.msra.mxu2 %v1242_v48 }
 0x218   : > { %1034 = vmatpush.bf16.msra.mxu0 %v1234_v3  ;;  %1047 = vmatpush.bf16.msra.mxu1 %v1238_v4  ;;  %v435_v36 = vpop.permute.xlu1 %434 }
 0x219   : > { %v438_v61 = vrot.slane %v435_v36, 4  ;;  %v392_v8 = vpop.permute.xlu0 %391 }
 0x21a   : > { %v395_v12 = vrot.slane %v392_v8, 4  ;;  %1061 = vmatpush.bf16.msra.mxu2 %v1230_v37 }
 0x21b   : > { %v440_v46 = vsel %vm354_vm11, %v438_v61, %v439_v10  ;;  %v1210_v10 = vor.u32 %v1290_v27, %v1209_v45 }
 0x21c   : > { %v442_v29 = vsel %vm441_vm7, %v435_v36, %v440_v46  ;;  %v397_v15 = vsel %vm354_vm11, %v395_v12, %v396_v62  ;;  %1035 = vmatpush.bf16.msra.mxu0 %v1222_v13  ;;  %1048 = vmatpush.bf16.msra.mxu1 %v1226_v44  ;;  %v1285_v62 = vld [vmem:[#allocation3 + $0x10] sm:$0xf0] }
 0x21d   : > { %446 = vst [vmem:[#allocation3 + $0x18] sm:$0xcc] %v442_v29  ;;  %v399_v49 = vsel %vm398_vm5, %v392_v8, %v397_v15  ;;  %v1287_v23 = vld [vmem:[#allocation3 + $0x20] sm:$0xf0]  ;;  %v1194_v25 = vor.u32 %v1285_v62, %v1193_v1  ;;  %v1199_v43 = vld [vmem:[#allocation3 + $0x24] sm:$0xf0] }
 0x21e   : > { %403 = vst [vmem:[#allocation3 + $0xc] sm:$0xcc] %v399_v49  ;;  %1062 = vmatpush.bf16.msra.mxu2 %v1218_v16 }
 0x220   : > { %1036 = vmatpush.bf16.msra.mxu0 %v1210_v10  ;;  %1049 = vmatpush.bf16.msra.mxu1 %v1214_v51  ;;  %v349_v21 = vpop.permute.xlu1 %348 }
 0x221   : > { %v352_v22 = vrot.slane %v349_v21, 4 }
 0x222   : > { %1063 = vmatpush.bf16.msra.mxu2 %v1206_v58 }
 0x223   : > { %v355_v63 = vsel %vm354_vm11, %v352_v22, %v353_v56 }
 0x224   : > { %v356_v24 = vsel %vm207_vm2, %v349_v21, %v355_v63  ;;  %v1197_v17 = vld [vmem:[#allocation3 + $0x18] sm:$0xf]  ;;  %v1286_v18 = vld [vmem:[#allocation3 + $0x1c] sm:$0xf] }
 0x225   : > { %360 = vst [vmem:[#allocation3] sm:$0xcc] %v356_v24  ;;  %v1198_v26 = vor.u32 %v1287_v23, %v1197_v17  ;;  %v1202_v41 = vor.u32 %v1286_v18, %v1199_v43  ;;  %v1284_v56 = vld [vmem:[#allocation3 + $0x8] sm:$0xf0]  ;;  %v1187_v31 = vld [vmem:[#allocation3 + $0xc] sm:$0xf0] }
 0x226   : > { %1064 = vmatpush.bf16.msra.mxu2 %v1194_v25 }
 0x227   : > { %1037 = vmatpush.bf16.msra.mxu0 %v1198_v26  ;;  %1050 = vmatpush.bf16.msra.mxu1 %v1202_v41 }
 0x229   : > { %1065 = vmatmul.bf16.vlgmr.msra.gmra.mxu2 %v864_v55 }
 0x22c   : > { %v1185_v28 = vld [vmem:[#allocation3] sm:$0xf]  ;;  %v1283_v30 = vld [vmem:[#allocation3 + $0x4] sm:$0xf] }
 0x22d   : > { %v1186_v32 = vor.u32 %v1284_v56, %v1185_v28  ;;  %v1190_v33 = vor.u32 %v1283_v30, %v1187_v31 }
 0x22f   : > { %1038 = vmatpush.bf16.msra.mxu0 %v1186_v32  ;;  %1051 = vmatpush.bf16.msra.mxu1 %v1190_v33 }
 0x232   : > { %1039 = vmatmul.bf16.vlgmr.msra.gmra.mxu0 %v864_v55  ;;  %1052 = vmatmul.bf16.vlgmr.msra.gmra.mxu1 %v864_v55 }
 0x266   : > { %v901_v34 = vpop.permute.xlu1 %900 }
 0x2ac   : > { %v1066_v35 = vpop.f32.mrf.mxu2 }
 0x2ad   : > { %v1067_v38 = vadd.f32 %v1066_v35, %v901_v34 }
 0x2af   : > { %1072 = vst [vmem:[%s190_s22 + $0x10] sm:$0xff] %v1067_v38  ;;  %v1040_v39 = vpop.f32.mrf.mxu0  ;;  %v1053_v40 = vpop.f32.mrf.mxu1 }
 0x2b0   : > { %v1041_v52 = vadd.f32 %v1040_v39, %v901_v34  ;;  %v1054_v53 = vadd.f32 %v1053_v40, %v901_v34 }
 0x2b2   : > { %1070 = vst [vmem:[%s190_s22] sm:$0xff] %v1041_v52 }
 0x2b3   : > { %1071 = vst [vmem:[%s190_s22 + $0x8] sm:$0xff] %v1054_v53 }
 0x2b4   : > { %v1068_v57 = vpop.f32.mrf.mxu2 }
 0x2b5   : > { %1450 = shalt.err (!%p1447_p4)
}
 0x2b6   : > { %1311 = dma.vmem_to_hbm [thread:$0]  (%p1597_p11), %s1088_s28, 384, %s1090_s8, %s1074_s16  }
 0x2b7   : > { %v1042_v60 = vpop.f32.mrf.mxu0  ;;  %v1055_v48 = vpop.f32.mrf.mxu1 }
 0x2b8 PF: > { %s1101_s29 = sand.u32 1, %s1477_s12   ;;  %p1934_p7 = scmp.ge.s32.totalorder %s1489_s15, 2 }
 0x2b9   : > { %s1102_s4 = scalar_lea.sflag [#allocation6], %s1101_s29 }
 0x2ba   : > { %p1318_p5 = pnand %p1934_p7, %p1601_p12 }
 0x2bc   : > { %p1319_p8 = pneg %p1318_p5 }
 0x2be   : > { %1472 = dma.done.wait (%p1319_p8), %s1102_s4, 384  }
 0x2bf   : > { %1474 = vsyncadd (%p1319_p8), %s1102_s4, 4294966912  ;;  %p16_p11 = scmp.ge.s32.totalorder %s1572_s18, 4   ;;  %s1935_s12 = smov %s1481_s13 }
 0x2c0   : > { %s1936_s13 = smov %s1485_s14  ;;  %s1937_s14 = smov %s1584_s21 }
 0x2c1   : > { %s1938_s15 = smov %s1572_s18  ;;  %18 = sbr.rel (!%p16_p11) target bundleno = 5 (0x5), region = 104 }
 0x2c6   :  { %1108 = vsyncpa [#allocation5], 1 }
 0x2c7   :  { %1110 = vsyncpa [#allocation5 + $0x1], 1 }
 0x2c8   :  { %1111 = vsyncpa [#allocation6], 1 }
 0x2c9   :  { %1113 = vsyncpa [#allocation6 + $0x1], 1 }

</bundles_post_ra>
